<compile_context>
chip_gen: v7x
topology: tpu7x:2x2x1
jax: 0.10.0
libtpu: 0.0.40
codegen_flags: <defaults>
</compile_context>

<pallas_src>
import jax
import jax.numpy as jnp
import numpy as np
from jax.experimental import pallas as pl
from jax.experimental.pallas import tpu as pltpu


def _hardswish(y):
    return y * (jnp.clip(y + 3.0, 0.0, 6.0) * (1.0 / 6.0))


def _sigmoid(y):
    # Exact sigmoid (maps are KB-sized and exp already runs on the EUP); kept exact so
    # the tight f32 tolerance against the reference holds.
    return 1.0 / (1.0 + jnp.exp(-y))


# ------------------------------ fused kernel ------------------------------
def _fused_kernel(x_ref,                      # (B, C, T*V)   lane-dense input block
                  aT_ref, aV_ref,             # (T*V, T) 1/V-avg,  (T*V, V) 1/T-avg
                  eT_ref, eV_ref, eVT_ref,    # (T, T*V), (V, T*V), (T*V, V) 0/1 expanders
                  wfcn_ref, bfcn_ref,         # fcn (BN folded): (Ci, C), (Ci, 1)
                  wup_ref, bup_ref,           # [conv_t; conv_v]: (2, C, Ci), (2, C, 1)
                  wvs_ref, bvs_ref,           # [fcn1(BN folded); conv_t1; conv_v1]: (3,V,V),(3,1,V)
                  o_ref):                     # (B, C, T*V)   lane-dense output block
    B, C, TV = x_ref.shape

    x = x_ref[...].astype(jnp.float32)        # (B, C, TV)

    aT = aT_ref[...]
    aV = aV_ref[...]
    eT = eT_ref[...]
    eV = eV_ref[...]
    eVT = eVT_ref[...]
    wfcn = wfcn_ref[...]
    bfcn = bfcn_ref[...]
    wt, wv = wup_ref[0], wup_ref[1]
    bt, bv = bup_ref[0], bup_ref[1]
    wf1, wt1, wv1 = wvs_ref[0], wvs_ref[1], wvs_ref[2]
    bf1, bt1, bv1 = bvs_ref[0], bvs_ref[1], bvs_ref[2]

    inv_c = 1.0 / C
    for b in range(B):                        # B is a small static int (unrolled)
        xb = x[b]                                                               # (C, TV)

        # Lane-dense means on the MXU (constant averaging matrices).
        m_tv = jnp.dot(xb, aT, preferred_element_type=jnp.float32)              # (C, T)  mean over V
        m_tm = jnp.dot(xb, aV, preferred_element_type=jnp.float32)              # (C, V)  mean over T
        # Mean over C: leading-dim sum, then "unflatten" (1,TV) -> (T,V) via the MXU
        # (avoids a cross-lane reshape of the row).
        r_c = jnp.sum(xb, axis=0, keepdims=True) * inv_c                        # (1, TV)
        m_c = jnp.dot(eT * r_c, eVT, preferred_element_type=jnp.float32)        # (T, V)

        # Branch 1 (channel attention), out-channel-major: no transposes needed.
        h_t = _hardswish(jnp.dot(wfcn, m_tv, preferred_element_type=jnp.float32) + bfcn)  # (Ci, T)
        h_v = _hardswish(jnp.dot(wfcn, m_tm, preferred_element_type=jnp.float32) + bfcn)  # (Ci, V)
        a_t = _sigmoid(jnp.dot(wt, h_t, preferred_element_type=jnp.float32) + bt)         # (C, T)
        a_v = _sigmoid(jnp.dot(wv, h_v, preferred_element_type=jnp.float32) + bv)         # (C, V)

        # Branch 2 (V acts as the channel dim), position-major: no transposes needed.
        g_c = _hardswish(jnp.dot(m_c, wf1, preferred_element_type=jnp.float32) + bf1)     # (T, V)
        g_t = _hardswish(jnp.dot(m_tm, wf1, preferred_element_type=jnp.float32) + bf1)    # (C, V)
        a_t1 = _sigmoid(jnp.dot(g_c, wt1, preferred_element_type=jnp.float32) + bt1)      # (T, V)
        a_v1 = _sigmoid(jnp.dot(g_t, wv1, preferred_element_type=jnp.float32) + bv1)      # (C, V)

        # Lane-dense broadcasted combine -> (C, TV).  Expansions are matmuls with 0/1
        # matrices (MXU); a_t1 is flattened to a (1, TV) row with a masked row-sum --
        # no reshape/relayout of any (C,T,V)-shaped tile.
        att1 = (jnp.dot(a_t, eT, preferred_element_type=jnp.float32)
                * jnp.dot(a_v, eV, preferred_element_type=jnp.float32))                   # (C, TV)
        a_t1_row = jnp.sum(jnp.dot(a_t1, eV, preferred_element_type=jnp.float32) * eT,
                           axis=0, keepdims=True)                                          # (1, TV)
        att2 = a_t1_row * jnp.dot(a_v1, eV, preferred_element_type=jnp.float32)           # (C, TV)

        o_ref[b] = ((att1 + att2) * 0.5).astype(o_ref.dtype)


def _bcast_spec(shape):
    # Whole (small) constant array, same block on every grid step (fetched once).
    return pl.BlockSpec(shape, lambda *_: (0,) * len(shape))


def _pick_block_n(N, C, T):
    """Batch elements per grid step: keep >= 2 grid steps (v7x megacore), B*T <= 256
    (MXU-pass width on v6e/v7x), B a divisor of N."""
    if C % 8 != 0:
        return 1
    max_b = min(max(1, N // 2), max(1, 256 // max(1, T)))
    for b in range(max_b, 0, -1):
        if N % b == 0:
            return b
    return 1


def st_joint_att33(x, params):
    """ST_Joint_Att33.forward (eval-mode BN).  x: (N, C, T, V) f32 -> (N, C, T, V) f32."""
    N, C, T, V = x.shape
    TV = T * V
    Ci = params["fcn_w"].shape[0]
    eps = params["bn_eps"]

    # ---- fold eval-mode BatchNorm into the preceding 1x1 convs (exact rewrite) ----
    s1 = params["fcn_bn_g"] / jnp.sqrt(params["fcn_bn_v"] + eps)                   # (Ci,)
    wfcn = (params["fcn_w"] * s1[:, None]).astype(jnp.float32)                     # (Ci, C)
    bfcn = (params["fcn_b"] * s1 + params["fcn_bn_b"]
            - params["fcn_bn_m"] * s1).reshape(Ci, 1).astype(jnp.float32)          # (Ci, 1)

    s2 = params["fcn1_bn_g"] / jnp.sqrt(params["fcn1_bn_v"] + eps)                 # (V,)
    wf1 = (params["fcn1_w"] * s2[:, None]).T.astype(jnp.float32)                   # (V_in, V_out)
    bf1 = (params["fcn1_b"] * s2 + params["fcn1_bn_b"]
           - params["fcn1_bn_m"] * s2).reshape(1, V).astype(jnp.float32)           # (1, V)

    # ---- pack weights: 12 arrays -> 6 kernel inputs ----
    w_up = jnp.stack([params["conv_t_w"], params["conv_v_w"]]).astype(jnp.float32)       # (2, C, Ci)
    b_up = jnp.stack([params["conv_t_b"].reshape(C, 1),
                      params["conv_v_b"].reshape(C, 1)]).astype(jnp.float32)             # (2, C, 1)
    w_vs = jnp.stack([wf1,
                      params["conv_t1_w"].T.astype(jnp.float32),
                      params["conv_v1_w"].T.astype(jnp.float32)])                        # (3, V, V)
    b_vs = jnp.stack([bf1,
                      params["conv_t1_b"].reshape(1, V).astype(jnp.float32),
                      params["conv_v1_b"].reshape(1, V).astype(jnp.float32)])            # (3, 1, V)

    # ---- constant averaging / expansion matrices (constant-folded under jit) ----
    col_t = jnp.arange(TV, dtype=jnp.int32) // V
    col_v = jnp.arange(TV, dtype=jnp.int32) % V
    eT = (col_t[None, :] == jnp.arange(T, dtype=jnp.int32)[:, None]).astype(jnp.float32)  # (T, TV)
    eV = (col_v[None, :] == jnp.arange(V, dtype=jnp.int32)[:, None]).astype(jnp.float32)  # (V, TV)
    aT = eT.T * (1.0 / V)                                                                  # (TV, T)
    aV = eV.T * (1.0 / T)                                                                  # (TV, V)
    eVT = eV.T                                                                             # (TV, V)

    B = _pick_block_n(N, C, T)
    x_flat = x.reshape(N, C, TV)                   # free trailing-dim reshape (lane-dense)

    out_flat = pl.pallas_call(
        _fused_kernel,
        out_shape=jax.ShapeDtypeStruct((N, C, TV), x.dtype),
        grid_spec=pltpu.PrefetchScalarGridSpec(
            num_scalar_prefetch=0,
            grid=(N // B,),
            in_specs=[
                pl.BlockSpec((B, C, TV), lambda n: (n, 0, 0)),     # x block (lane-dense)
                _bcast_spec((TV, T)), _bcast_spec((TV, V)),        # averaging matrices
                _bcast_spec((T, TV)), _bcast_spec((V, TV)), _bcast_spec((TV, V)),  # expanders
                _bcast_spec((Ci, C)), _bcast_spec((Ci, 1)),        # fcn (BN folded)
                _bcast_spec((2, C, Ci)), _bcast_spec((2, C, 1)),   # conv_t / conv_v
                _bcast_spec((3, V, V)), _bcast_spec((3, 1, V)),    # fcn1 / conv_t1 / conv_v1
            ],
            out_specs=pl.BlockSpec((B, C, TV), lambda n: (n, 0, 0)),
        ),
        compiler_params=pltpu.CompilerParams(dimension_semantics=("parallel",)),
    )(x_flat, aT, aV, eT, eV, eVT, wfcn, bfcn, w_up, b_up, w_vs, b_vs)

    return out_flat.reshape(N, C, T, V)            # free trailing-dim reshape


# ------------------------------ test scaffolding ------------------------------
def make_params(key, channel, reduct_ratio, V=25):
    """Deterministic synthetic parameters, PyTorch-style layouts (out_ch, in_ch)."""
    inner = channel // reduct_ratio
    ks = jax.random.split(key, 16)
    w = lambda k, shape: 0.1 * jax.random.normal(k, shape, jnp.float32)
    return {
        # fcn: Conv2d(C -> Ci, 1, bias=True) + BatchNorm2d(Ci)
        "fcn_w": w(ks[0], (inner, channel)), "fcn_b": w(ks[1], (inner,)),
        "fcn_bn_g": 1.0 + 0.05 * jax.random.normal(ks[2], (inner,), jnp.float32),
        "fcn_bn_b": 0.05 * jax.random.normal(ks[3], (inner,), jnp.float32),
        "fcn_bn_m": jnp.linspace(-0.1, 0.1, inner, dtype=jnp.float32),
        "fcn_bn_v": jnp.linspace(0.5, 1.5, inner, dtype=jnp.float32),
        # conv_t / conv_v: Conv2d(Ci -> C, 1)
        "conv_t_w": w(ks[4], (channel, inner)), "conv_t_b": w(ks[5], (channel,)),
        "conv_v_w": w(ks[6], (channel, inner)), "conv_v_b": w(ks[7], (channel,)),
        # fcn1: Conv2d(25 -> 25, 1, bias=True) + BatchNorm2d(25)
        "fcn1_w": w(ks[8], (V, V)), "fcn1_b": w(ks[9], (V,)),
        "fcn1_bn_g": 1.0 + 0.05 * jax.random.normal(ks[10], (V,), jnp.float32),
        "fcn1_bn_b": 0.05 * jax.random.normal(ks[11], (V,), jnp.float32),
        "fcn1_bn_m": jnp.linspace(-0.1, 0.1, V, dtype=jnp.float32),
        "fcn1_bn_v": jnp.linspace(0.5, 1.5, V, dtype=jnp.float32),
        # conv_t1 / conv_v1: Conv2d(25 -> 25, 1)
        "conv_t1_w": w(ks[12], (V, V)), "conv_t1_b": w(ks[13], (V,)),
        "conv_v1_w": w(ks[14], (V, V)), "conv_v1_b": w(ks[15], (V,)),
        "bn_eps": 1e-5,
    }


def _reference(x, p):
    """Pure-JAX mirror of ST_Joint_Att33.forward (eval-mode BatchNorm)."""
    N, C, T, V = x.shape
    eps = p["bn_eps"]
    hp = jax.lax.Precision.HIGHEST

    def conv1x1(inp, w, b):      # inp (N, Cin, H, W), w (Cout, Cin), b (Cout,)
        return jnp.einsum("oc,nchw->nohw", w, inp, precision=hp) + b[None, :, None, None]

    def bn2d(inp, g, bb, m, v):
        s = g / jnp.sqrt(v + eps)
        return inp * s[None, :, None, None] + (bb - m * s)[None, :, None, None]

    # branch 1
    x_t = jnp.mean(x, axis=3, keepdims=True)                                        # (N,C,T,1)
    x_v = jnp.transpose(jnp.mean(x, axis=2, keepdims=True), (0, 1, 3, 2))           # (N,C,V,1)
    xa = _hardswish(bn2d(conv1x1(jnp.concatenate([x_t, x_v], axis=2),
                                 p["fcn_w"], p["fcn_b"]),
                         p["fcn_bn_g"], p["fcn_bn_b"], p["fcn_bn_m"], p["fcn_bn_v"]))
    x_t, x_v = xa[:, :, :T], xa[:, :, T:]
    x_t_att = _sigmoid(conv1x1(x_t, p["conv_t_w"], p["conv_t_b"]))                  # (N,C,T,1)
    x_v_att = _sigmoid(conv1x1(jnp.transpose(x_v, (0, 1, 3, 2)),
                               p["conv_v_w"], p["conv_v_b"]))                       # (N,C,1,V)
    att1 = x_t_att * x_v_att                                                        # (N,C,T,V)

    # branch 2
    x_c = jnp.transpose(jnp.mean(x, axis=1, keepdims=True), (0, 3, 2, 1))           # (N,V,T,1)
    x_t2 = jnp.transpose(jnp.mean(x, axis=2, keepdims=True), (0, 3, 1, 2))          # (N,V,C,1)
    xa = _hardswish(bn2d(conv1x1(jnp.concatenate([x_c, x_t2], axis=2),
                                 p["fcn1_w"], p["fcn1_b"]),
                         p["fcn1_bn_g"], p["fcn1_bn_b"], p["fcn1_bn_m"], p["fcn1_bn_v"]))
    x_c, x_t2 = xa[:, :, :T], xa[:, :, T:]
    x_t_att = _sigmoid(conv1x1(x_c, p["conv_t1_w"], p["conv_t1_b"]))                # (N,V,T,1)
    x_c_att = _sigmoid(conv1x1(jnp.transpose(x_t2, (0, 1, 3, 2)),
                               p["conv_v1_w"], p["conv_v1_b"]))                     # (N,V,1,C)
    att2 = jnp.transpose(x_t_att * x_c_att, (0, 3, 2, 1))                           # (N,C,T,V)

    return (att1 + att2) * 0.5


if __name__ == "__main__":
    # V=25 is required by the module (fcn1/conv_t1/conv_v1 are hard-coded 25-channel).
    N, C, T, V = 2, 32, 16, 25
    reduct_ratio = 4

    key = jax.random.PRNGKey(0)
    kx, kp = jax.random.split(key)
    x = jax.random.normal(kx, (N, C, T, V), jnp.float32)
    params = make_params(kp, C, reduct_ratio, V=V)

    fn = jax.jit(st_joint_att33)

    # Primary check (N=2 -> block B=1, grid of 2 parallel steps).
    out = jax.block_until_ready(fn(x, params))
    ref = _reference(x, params)
    np.testing.assert_allclose(np.asarray(out), np.asarray(ref), rtol=1e-4, atol=1e-5)

    # Secondary check exercising the batched (B>1) grid path (N=8 -> B=4, 2 grid steps).
    x8 = jax.random.normal(jax.random.PRNGKey(1), (8, C, T, V), jnp.float32)
    out8 = jax.block_until_ready(fn(x8, params))
    ref8 = _reference(x8, params)
    np.testing.assert_allclose(np.asarray(out8), np.asarray(ref8), rtol=1e-4, atol=1e-5)

    print("KERNEL_OK")
</pallas_src>

<mosaic_0001>
module attributes {stable_mosaic.version = 11 : i64} {
  func.func @_fused_kernel(%arg0: i32, %arg1: memref<1x32x400xf32, #tpu.memory_space<vmem>>, %arg2: memref<400x16xf32, #tpu.memory_space<vmem>>, %arg3: memref<400x25xf32, #tpu.memory_space<vmem>>, %arg4: memref<16x400xf32, #tpu.memory_space<vmem>>, %arg5: memref<25x400xf32, #tpu.memory_space<vmem>>, %arg6: memref<400x25xf32, #tpu.memory_space<vmem>>, %arg7: memref<8x32xf32, #tpu.memory_space<vmem>>, %arg8: memref<8x1xf32, #tpu.memory_space<vmem>>, %arg9: memref<2x32x8xf32, #tpu.memory_space<vmem>>, %arg10: memref<2x32x1xf32, #tpu.memory_space<vmem>>, %arg11: memref<3x25x25xf32, #tpu.memory_space<vmem>>, %arg12: memref<3x1x25xf32, #tpu.memory_space<vmem>>, %arg13: memref<1x32x400xf32, #tpu.memory_space<vmem>>) attributes {dimension_semantics = [#tpu.dimension_semantics<parallel>], iteration_bounds = array<i64: 2>, scalar_prefetch = 0 : i64, scratch_operands = 0 : i64, tpu.core_type = #tpu.core_type<tc>, window_params = [{transform_indices = @transform_0, window_bounds = array<i64: 1, 32, 400>}, {pipeline_mode = #tpu.pipeline_mode<synchronous>, transform_indices = @transform_1, window_bounds = array<i64: 400, 16>}, {pipeline_mode = #tpu.pipeline_mode<synchronous>, transform_indices = @transform_2, window_bounds = array<i64: 400, 25>}, {pipeline_mode = #tpu.pipeline_mode<synchronous>, transform_indices = @transform_3, window_bounds = array<i64: 16, 400>}, {pipeline_mode = #tpu.pipeline_mode<synchronous>, transform_indices = @transform_4, window_bounds = array<i64: 25, 400>}, {pipeline_mode = #tpu.pipeline_mode<synchronous>, transform_indices = @transform_5, window_bounds = array<i64: 400, 25>}, {pipeline_mode = #tpu.pipeline_mode<synchronous>, transform_indices = @transform_6, window_bounds = array<i64: 8, 32>}, {pipeline_mode = #tpu.pipeline_mode<synchronous>, transform_indices = @transform_7, window_bounds = array<i64: 8, 1>}, {pipeline_mode = #tpu.pipeline_mode<synchronous>, transform_indices = @transform_8, window_bounds = array<i64: 2, 32, 8>}, {pipeline_mode = #tpu.pipeline_mode<synchronous>, transform_indices = @transform_9, window_bounds = array<i64: 2, 32, 1>}, {pipeline_mode = #tpu.pipeline_mode<synchronous>, transform_indices = @transform_10, window_bounds = array<i64: 3, 25, 25>}, {pipeline_mode = #tpu.pipeline_mode<synchronous>, transform_indices = @transform_11, window_bounds = array<i64: 3, 1, 25>}, {transform_indices = @transform_12, window_bounds = array<i64: 1, 32, 400>}]} {
    %c0 = arith.constant 0 : index
    %c0_0 = arith.constant 0 : index
    %c0_1 = arith.constant 0 : index
    %0 = vector.load %arg1[%c0, %c0_0, %c0_1] : memref<1x32x400xf32, #tpu.memory_space<vmem>>, vector<1x32x400xf32>
    %c0_2 = arith.constant 0 : index
    %c0_3 = arith.constant 0 : index
    %1 = vector.load %arg2[%c0_2, %c0_3] : memref<400x16xf32, #tpu.memory_space<vmem>>, vector<400x16xf32>
    %c0_4 = arith.constant 0 : index
    %c0_5 = arith.constant 0 : index
    %2 = vector.load %arg3[%c0_4, %c0_5] : memref<400x25xf32, #tpu.memory_space<vmem>>, vector<400x25xf32>
    %c0_6 = arith.constant 0 : index
    %c0_7 = arith.constant 0 : index
    %3 = vector.load %arg4[%c0_6, %c0_7] : memref<16x400xf32, #tpu.memory_space<vmem>>, vector<16x400xf32>
    %c0_8 = arith.constant 0 : index
    %c0_9 = arith.constant 0 : index
    %4 = vector.load %arg5[%c0_8, %c0_9] : memref<25x400xf32, #tpu.memory_space<vmem>>, vector<25x400xf32>
    %c0_10 = arith.constant 0 : index
    %c0_11 = arith.constant 0 : index
    %5 = vector.load %arg6[%c0_10, %c0_11] : memref<400x25xf32, #tpu.memory_space<vmem>>, vector<400x25xf32>
    %c0_12 = arith.constant 0 : index
    %c0_13 = arith.constant 0 : index
    %6 = vector.load %arg7[%c0_12, %c0_13] : memref<8x32xf32, #tpu.memory_space<vmem>>, vector<8x32xf32>
    %c0_14 = arith.constant 0 : index
    %c0_15 = arith.constant 0 : index
    %7 = vector.load %arg8[%c0_14, %c0_15] : memref<8x1xf32, #tpu.memory_space<vmem>>, vector<8x1xf32>
    %c0_16 = arith.constant 0 : index
    %c0_17 = arith.constant 0 : index
    %c0_18 = arith.constant 0 : index
    %8 = vector.load %arg9[%c0_16, %c0_17, %c0_18] : memref<2x32x8xf32, #tpu.memory_space<vmem>>, vector<1x32x8xf32>
    %9 = vector.shape_cast %8 : vector<1x32x8xf32> to vector<32x8xf32>
    %c1 = arith.constant 1 : index
    %c0_19 = arith.constant 0 : index
    %c0_20 = arith.constant 0 : index
    %10 = vector.load %arg9[%c1, %c0_19, %c0_20] : memref<2x32x8xf32, #tpu.memory_space<vmem>>, vector<1x32x8xf32>
    %11 = vector.shape_cast %10 : vector<1x32x8xf32> to vector<32x8xf32>
    %c0_21 = arith.constant 0 : index
    %c0_22 = arith.constant 0 : index
    %c0_23 = arith.constant 0 : index
    %12 = vector.load %arg10[%c0_21, %c0_22, %c0_23] : memref<2x32x1xf32, #tpu.memory_space<vmem>>, vector<1x32x1xf32>
    %13 = vector.shape_cast %12 : vector<1x32x1xf32> to vector<32x1xf32>
    %c1_24 = arith.constant 1 : index
    %c0_25 = arith.constant 0 : index
    %c0_26 = arith.constant 0 : index
    %14 = vector.load %arg10[%c1_24, %c0_25, %c0_26] : memref<2x32x1xf32, #tpu.memory_space<vmem>>, vector<1x32x1xf32>
    %15 = vector.shape_cast %14 : vector<1x32x1xf32> to vector<32x1xf32>
    %c0_27 = arith.constant 0 : index
    %c0_28 = arith.constant 0 : index
    %c0_29 = arith.constant 0 : index
    %16 = vector.load %arg11[%c0_27, %c0_28, %c0_29] : memref<3x25x25xf32, #tpu.memory_space<vmem>>, vector<1x25x25xf32>
    %17 = vector.shape_cast %16 : vector<1x25x25xf32> to vector<25x25xf32>
    %c1_30 = arith.constant 1 : index
    %c0_31 = arith.constant 0 : index
    %c0_32 = arith.constant 0 : index
    %18 = vector.load %arg11[%c1_30, %c0_31, %c0_32] : memref<3x25x25xf32, #tpu.memory_space<vmem>>, vector<1x25x25xf32>
    %19 = vector.shape_cast %18 : vector<1x25x25xf32> to vector<25x25xf32>
    %c2 = arith.constant 2 : index
    %c0_33 = arith.constant 0 : index
    %c0_34 = arith.constant 0 : index
    %20 = vector.load %arg11[%c2, %c0_33, %c0_34] : memref<3x25x25xf32, #tpu.memory_space<vmem>>, vector<1x25x25xf32>
    %21 = vector.shape_cast %20 : vector<1x25x25xf32> to vector<25x25xf32>
    %c0_35 = arith.constant 0 : index
    %c0_36 = arith.constant 0 : index
    %c0_37 = arith.constant 0 : index
    %22 = vector.load %arg12[%c0_35, %c0_36, %c0_37] : memref<3x1x25xf32, #tpu.memory_space<vmem>>, vector<1x1x25xf32>
    %23 = vector.shape_cast %22 : vector<1x1x25xf32> to vector<1x25xf32>
    %c1_38 = arith.constant 1 : index
    %c0_39 = arith.constant 0 : index
    %c0_40 = arith.constant 0 : index
    %24 = vector.load %arg12[%c1_38, %c0_39, %c0_40] : memref<3x1x25xf32, #tpu.memory_space<vmem>>, vector<1x1x25xf32>
    %25 = vector.shape_cast %24 : vector<1x1x25xf32> to vector<1x25xf32>
    %c2_41 = arith.constant 2 : index
    %c0_42 = arith.constant 0 : index
    %c0_43 = arith.constant 0 : index
    %26 = vector.load %arg12[%c2_41, %c0_42, %c0_43] : memref<3x1x25xf32, #tpu.memory_space<vmem>>, vector<1x1x25xf32>
    %27 = vector.shape_cast %26 : vector<1x1x25xf32> to vector<1x25xf32>
    %28 = vector.shape_cast %0 : vector<1x32x400xf32> to vector<32x400xf32>
    %cst = arith.constant dense<0.000000e+00> : vector<32x16xf32>
    %29 = tpu.matmul %28, %1, %cst {dimension_numbers = #tpu.dot_dimension_numbers<[1], [0], [0], [1], [0, 0, 1, 1], [], []>} : vector<32x400xf32>, vector<400x16xf32>, vector<32x16xf32> -> vector<32x16xf32>
    %cst_44 = arith.constant dense<0.000000e+00> : vector<32x25xf32>
    %30 = tpu.matmul %28, %2, %cst_44 {dimension_numbers = #tpu.dot_dimension_numbers<[1], [0], [0], [1], [0, 0, 1, 1], [], []>} : vector<32x400xf32>, vector<400x25xf32>, vector<32x25xf32> -> vector<32x25xf32>
    %cst_45 = arith.constant dense<0.000000e+00> : vector<400xf32>
    %31 = vector.multi_reduction <add>, %28, %cst_45 [0] : vector<32x400xf32> to vector<400xf32>
    %32 = vector.shape_cast %31 : vector<400xf32> to vector<1x400xf32>
    %cst_46 = arith.constant 3.125000e-02 : f32
    %33 = vector.broadcast %cst_46 : f32 to vector<1x400xf32>
    %34 = arith.mulf %32, %33 : vector<1x400xf32>
    %35 = vector.broadcast %34 : vector<1x400xf32> to vector<16x400xf32>
    %36 = arith.mulf %3, %35 : vector<16x400xf32>
    %cst_47 = arith.constant dense<0.000000e+00> : vector<16x25xf32>
    %37 = tpu.matmul %36, %5, %cst_47 {dimension_numbers = #tpu.dot_dimension_numbers<[1], [0], [0], [1], [0, 0, 1, 1], [], []>} : vector<16x400xf32>, vector<400x25xf32>, vector<16x25xf32> -> vector<16x25xf32>
    %cst_48 = arith.constant dense<0.000000e+00> : vector<8x16xf32>
    %38 = tpu.matmul %6, %29, %cst_48 {dimension_numbers = #tpu.dot_dimension_numbers<[1], [0], [0], [1], [0, 0, 1, 1], [], []>} : vector<8x32xf32>, vector<32x16xf32>, vector<8x16xf32> -> vector<8x16xf32>
    %39 = vector.broadcast %7 : vector<8x1xf32> to vector<8x16xf32>
    %40 = arith.addf %38, %39 : vector<8x16xf32>
    %cst_49 = arith.constant 3.000000e+00 : f32
    %41 = vector.broadcast %cst_49 : f32 to vector<8x16xf32>
    %42 = arith.addf %40, %41 : vector<8x16xf32>
    %cst_50 = arith.constant 0.000000e+00 : f32
    %cst_51 = arith.constant 6.000000e+00 : f32
    %43 = vector.broadcast %cst_50 : f32 to vector<8x16xf32>
    %44 = arith.maximumf %43, %42 : vector<8x16xf32>
    %45 = vector.broadcast %cst_51 : f32 to vector<8x16xf32>
    %46 = arith.minimumf %45, %44 : vector<8x16xf32>
    %cst_52 = arith.constant 0.166666672 : f32
    %47 = vector.broadcast %cst_52 : f32 to vector<8x16xf32>
    %48 = arith.mulf %46, %47 : vector<8x16xf32>
    %49 = arith.mulf %40, %48 : vector<8x16xf32>
    %cst_53 = arith.constant dense<0.000000e+00> : vector<8x25xf32>
    %50 = tpu.matmul %6, %30, %cst_53 {dimension_numbers = #tpu.dot_dimension_numbers<[1], [0], [0], [1], [0, 0, 1, 1], [], []>} : vector<8x32xf32>, vector<32x25xf32>, vector<8x25xf32> -> vector<8x25xf32>
    %51 = vector.broadcast %7 : vector<8x1xf32> to vector<8x25xf32>
    %52 = arith.addf %50, %51 : vector<8x25xf32>
    %cst_54 = arith.constant 3.000000e+00 : f32
    %53 = vector.broadcast %cst_54 : f32 to vector<8x25xf32>
    %54 = arith.addf %52, %53 : vector<8x25xf32>
    %cst_55 = arith.constant 0.000000e+00 : f32
    %cst_56 = arith.constant 6.000000e+00 : f32
    %55 = vector.broadcast %cst_55 : f32 to vector<8x25xf32>
    %56 = arith.maximumf %55, %54 : vector<8x25xf32>
    %57 = vector.broadcast %cst_56 : f32 to vector<8x25xf32>
    %58 = arith.minimumf %57, %56 : vector<8x25xf32>
    %cst_57 = arith.constant 0.166666672 : f32
    %59 = vector.broadcast %cst_57 : f32 to vector<8x25xf32>
    %60 = arith.mulf %58, %59 : vector<8x25xf32>
    %61 = arith.mulf %52, %60 : vector<8x25xf32>
    %cst_58 = arith.constant dense<0.000000e+00> : vector<32x16xf32>
    %62 = tpu.matmul %9, %49, %cst_58 {dimension_numbers = #tpu.dot_dimension_numbers<[1], [0], [0], [1], [0, 0, 1, 1], [], []>} : vector<32x8xf32>, vector<8x16xf32>, vector<32x16xf32> -> vector<32x16xf32>
    %63 = vector.broadcast %13 : vector<32x1xf32> to vector<32x16xf32>
    %64 = arith.addf %62, %63 : vector<32x16xf32>
    %cst_59 = arith.constant 0.000000e+00 : f32
    %65 = vector.broadcast %cst_59 : f32 to vector<32x16xf32>
    %66 = arith.subf %65, %64 : vector<32x16xf32>
    %67 = math.exp %66 : vector<32x16xf32>
    %cst_60 = arith.constant 1.000000e+00 : f32
    %68 = vector.broadcast %cst_60 : f32 to vector<32x16xf32>
    %69 = arith.addf %68, %67 : vector<32x16xf32>
    %cst_61 = arith.constant 1.000000e+00 : f32
    %70 = vector.broadcast %cst_61 : f32 to vector<32x16xf32>
    %71 = arith.divf %70, %69 : vector<32x16xf32>
    %cst_62 = arith.constant dense<0.000000e+00> : vector<32x25xf32>
    %72 = tpu.matmul %11, %61, %cst_62 {dimension_numbers = #tpu.dot_dimension_numbers<[1], [0], [0], [1], [0, 0, 1, 1], [], []>} : vector<32x8xf32>, vector<8x25xf32>, vector<32x25xf32> -> vector<32x25xf32>
    %73 = vector.broadcast %15 : vector<32x1xf32> to vector<32x25xf32>
    %74 = arith.addf %72, %73 : vector<32x25xf32>
    %cst_63 = arith.constant 0.000000e+00 : f32
    %75 = vector.broadcast %cst_63 : f32 to vector<32x25xf32>
    %76 = arith.subf %75, %74 : vector<32x25xf32>
    %77 = math.exp %76 : vector<32x25xf32>
    %cst_64 = arith.constant 1.000000e+00 : f32
    %78 = vector.broadcast %cst_64 : f32 to vector<32x25xf32>
    %79 = arith.addf %78, %77 : vector<32x25xf32>
    %cst_65 = arith.constant 1.000000e+00 : f32
    %80 = vector.broadcast %cst_65 : f32 to vector<32x25xf32>
    %81 = arith.divf %80, %79 : vector<32x25xf32>
    %cst_66 = arith.constant dense<0.000000e+00> : vector<16x25xf32>
    %82 = tpu.matmul %37, %17, %cst_66 {dimension_numbers = #tpu.dot_dimension_numbers<[1], [0], [0], [1], [0, 0, 1, 1], [], []>} : vector<16x25xf32>, vector<25x25xf32>, vector<16x25xf32> -> vector<16x25xf32>
    %83 = vector.broadcast %23 : vector<1x25xf32> to vector<16x25xf32>
    %84 = arith.addf %82, %83 : vector<16x25xf32>
    %cst_67 = arith.constant 3.000000e+00 : f32
    %85 = vector.broadcast %cst_67 : f32 to vector<16x25xf32>
    %86 = arith.addf %84, %85 : vector<16x25xf32>
    %cst_68 = arith.constant 0.000000e+00 : f32
    %cst_69 = arith.constant 6.000000e+00 : f32
    %87 = vector.broadcast %cst_68 : f32 to vector<16x25xf32>
    %88 = arith.maximumf %87, %86 : vector<16x25xf32>
    %89 = vector.broadcast %cst_69 : f32 to vector<16x25xf32>
    %90 = arith.minimumf %89, %88 : vector<16x25xf32>
    %cst_70 = arith.constant 0.166666672 : f32
    %91 = vector.broadcast %cst_70 : f32 to vector<16x25xf32>
    %92 = arith.mulf %90, %91 : vector<16x25xf32>
    %93 = arith.mulf %84, %92 : vector<16x25xf32>
    %cst_71 = arith.constant dense<0.000000e+00> : vector<32x25xf32>
    %94 = tpu.matmul %30, %17, %cst_71 {dimension_numbers = #tpu.dot_dimension_numbers<[1], [0], [0], [1], [0, 0, 1, 1], [], []>} : vector<32x25xf32>, vector<25x25xf32>, vector<32x25xf32> -> vector<32x25xf32>
    %95 = vector.broadcast %23 : vector<1x25xf32> to vector<32x25xf32>
    %96 = arith.addf %94, %95 : vector<32x25xf32>
    %cst_72 = arith.constant 3.000000e+00 : f32
    %97 = vector.broadcast %cst_72 : f32 to vector<32x25xf32>
    %98 = arith.addf %96, %97 : vector<32x25xf32>
    %cst_73 = arith.constant 0.000000e+00 : f32
    %cst_74 = arith.constant 6.000000e+00 : f32
    %99 = vector.broadcast %cst_73 : f32 to vector<32x25xf32>
    %100 = arith.maximumf %99, %98 : vector<32x25xf32>
    %101 = vector.broadcast %cst_74 : f32 to vector<32x25xf32>
    %102 = arith.minimumf %101, %100 : vector<32x25xf32>
    %cst_75 = arith.constant 0.166666672 : f32
    %103 = vector.broadcast %cst_75 : f32 to vector<32x25xf32>
    %104 = arith.mulf %102, %103 : vector<32x25xf32>
    %105 = arith.mulf %96, %104 : vector<32x25xf32>
    %cst_76 = arith.constant dense<0.000000e+00> : vector<16x25xf32>
    %106 = tpu.matmul %93, %19, %cst_76 {dimension_numbers = #tpu.dot_dimension_numbers<[1], [0], [0], [1], [0, 0, 1, 1], [], []>} : vector<16x25xf32>, vector<25x25xf32>, vector<16x25xf32> -> vector<16x25xf32>
    %107 = vector.broadcast %25 : vector<1x25xf32> to vector<16x25xf32>
    %108 = arith.addf %106, %107 : vector<16x25xf32>
    %cst_77 = arith.constant 0.000000e+00 : f32
    %109 = vector.broadcast %cst_77 : f32 to vector<16x25xf32>
    %110 = arith.subf %109, %108 : vector<16x25xf32>
    %111 = math.exp %110 : vector<16x25xf32>
    %cst_78 = arith.constant 1.000000e+00 : f32
    %112 = vector.broadcast %cst_78 : f32 to vector<16x25xf32>
    %113 = arith.addf %112, %111 : vector<16x25xf32>
    %cst_79 = arith.constant 1.000000e+00 : f32
    %114 = vector.broadcast %cst_79 : f32 to vector<16x25xf32>
    %115 = arith.divf %114, %113 : vector<16x25xf32>
    %cst_80 = arith.constant dense<0.000000e+00> : vector<32x25xf32>
    %116 = tpu.matmul %105, %21, %cst_80 {dimension_numbers = #tpu.dot_dimension_numbers<[1], [0], [0], [1], [0, 0, 1, 1], [], []>} : vector<32x25xf32>, vector<25x25xf32>, vector<32x25xf32> -> vector<32x25xf32>
    %117 = vector.broadcast %27 : vector<1x25xf32> to vector<32x25xf32>
    %118 = arith.addf %116, %117 : vector<32x25xf32>
    %cst_81 = arith.constant 0.000000e+00 : f32
    %119 = vector.broadcast %cst_81 : f32 to vector<32x25xf32>
    %120 = arith.subf %119, %118 : vector<32x25xf32>
    %121 = math.exp %120 : vector<32x25xf32>
    %cst_82 = arith.constant 1.000000e+00 : f32
    %122 = vector.broadcast %cst_82 : f32 to vector<32x25xf32>
    %123 = arith.addf %122, %121 : vector<32x25xf32>
    %cst_83 = arith.constant 1.000000e+00 : f32
    %124 = vector.broadcast %cst_83 : f32 to vector<32x25xf32>
    %125 = arith.divf %124, %123 : vector<32x25xf32>
    %cst_84 = arith.constant dense<0.000000e+00> : vector<32x400xf32>
    %126 = tpu.matmul %71, %3, %cst_84 {dimension_numbers = #tpu.dot_dimension_numbers<[1], [0], [0], [1], [0, 0, 1, 1], [], []>} : vector<32x16xf32>, vector<16x400xf32>, vector<32x400xf32> -> vector<32x400xf32>
    %cst_85 = arith.constant dense<0.000000e+00> : vector<32x400xf32>
    %127 = tpu.matmul %81, %4, %cst_85 {dimension_numbers = #tpu.dot_dimension_numbers<[1], [0], [0], [1], [0, 0, 1, 1], [], []>} : vector<32x25xf32>, vector<25x400xf32>, vector<32x400xf32> -> vector<32x400xf32>
    %128 = arith.mulf %126, %127 : vector<32x400xf32>
    %cst_86 = arith.constant dense<0.000000e+00> : vector<16x400xf32>
    %129 = tpu.matmul %115, %4, %cst_86 {dimension_numbers = #tpu.dot_dimension_numbers<[1], [0], [0], [1], [0, 0, 1, 1], [], []>} : vector<16x25xf32>, vector<25x400xf32>, vector<16x400xf32> -> vector<16x400xf32>
    %130 = arith.mulf %129, %3 : vector<16x400xf32>
    %cst_87 = arith.constant dense<0.000000e+00> : vector<400xf32>
    %131 = vector.multi_reduction <add>, %130, %cst_87 [0] : vector<16x400xf32> to vector<400xf32>
    %132 = vector.shape_cast %131 : vector<400xf32> to vector<1x400xf32>
    %cst_88 = arith.constant dense<0.000000e+00> : vector<32x400xf32>
    %133 = tpu.matmul %125, %4, %cst_88 {dimension_numbers = #tpu.dot_dimension_numbers<[1], [0], [0], [1], [0, 0, 1, 1], [], []>} : vector<32x25xf32>, vector<25x400xf32>, vector<32x400xf32> -> vector<32x400xf32>
    %134 = vector.broadcast %132 : vector<1x400xf32> to vector<32x400xf32>
    %135 = arith.mulf %134, %133 : vector<32x400xf32>
    %136 = arith.addf %128, %135 : vector<32x400xf32>
    %cst_89 = arith.constant 5.000000e-01 : f32
    %137 = vector.broadcast %cst_89 : f32 to vector<32x400xf32>
    %138 = arith.mulf %136, %137 : vector<32x400xf32>
    %c0_90 = arith.constant 0 : index
    %c0_91 = arith.constant 0 : index
    %c0_92 = arith.constant 0 : index
    %139 = vector.load %arg13[%c0_90, %c0_91, %c0_92] : memref<1x32x400xf32, #tpu.memory_space<vmem>>, vector<1x32x400xf32>
    %140 = vector.shape_cast %139 : vector<1x32x400xf32> to vector<32x400xf32>
    %141 = vector.shape_cast %138 : vector<32x400xf32> to vector<1x32x400xf32>
    tpu.vector_store %arg13[%c0_90, %c0_91, %c0_92], %141 {strides = array<i32>} : memref<1x32x400xf32, #tpu.memory_space<vmem>>, vector<1x32x400xf32>,
    return
  }
  func.func @transform_0(%arg0: i32) -> (i32, i32, i32) {
    %c0_i32 = arith.constant 0 : i32
    %c0_i32_0 = arith.constant 0 : i32
    %c0_i32_1 = arith.constant 0 : i32
    return %arg0, %c0_i32, %c0_i32_0 : i32, i32, i32
  }
  func.func @transform_1(%arg0: i32) -> (i32, i32) {
    %c0_i32 = arith.constant 0 : i32
    %c0_i32_0 = arith.constant 0 : i32
    %c0_i32_1 = arith.constant 0 : i32
    return %c0_i32, %c0_i32_0 : i32, i32
  }
  func.func @transform_2(%arg0: i32) -> (i32, i32) {
    %c0_i32 = arith.constant 0 : i32
    %c0_i32_0 = arith.constant 0 : i32
    %c0_i32_1 = arith.constant 0 : i32
    return %c0_i32, %c0_i32_0 : i32, i32
  }
  func.func @transform_3(%arg0: i32) -> (i32, i32) {
    %c0_i32 = arith.constant 0 : i32
    %c0_i32_0 = arith.constant 0 : i32
    %c0_i32_1 = arith.constant 0 : i32
    return %c0_i32, %c0_i32_0 : i32, i32
  }
  func.func @transform_4(%arg0: i32) -> (i32, i32) {
    %c0_i32 = arith.constant 0 : i32
    %c0_i32_0 = arith.constant 0 : i32
    %c0_i32_1 = arith.constant 0 : i32
    return %c0_i32, %c0_i32_0 : i32, i32
  }
  func.func @transform_5(%arg0: i32) -> (i32, i32) {
    %c0_i32 = arith.constant 0 : i32
    %c0_i32_0 = arith.constant 0 : i32
    %c0_i32_1 = arith.constant 0 : i32
    return %c0_i32, %c0_i32_0 : i32, i32
  }
  func.func @transform_6(%arg0: i32) -> (i32, i32) {
    %c0_i32 = arith.constant 0 : i32
    %c0_i32_0 = arith.constant 0 : i32
    %c0_i32_1 = arith.constant 0 : i32
    return %c0_i32, %c0_i32_0 : i32, i32
  }
  func.func @transform_7(%arg0: i32) -> (i32, i32) {
    %c0_i32 = arith.constant 0 : i32
    %c0_i32_0 = arith.constant 0 : i32
    %c0_i32_1 = arith.constant 0 : i32
    return %c0_i32, %c0_i32_0 : i32, i32
  }
  func.func @transform_8(%arg0: i32) -> (i32, i32, i32) {
    %c0_i32 = arith.constant 0 : i32
    %c0_i32_0 = arith.constant 0 : i32
    %c0_i32_1 = arith.constant 0 : i32
    %c0_i32_2 = arith.constant 0 : i32
    return %c0_i32, %c0_i32_0, %c0_i32_1 : i32, i32, i32
  }
  func.func @transform_9(%arg0: i32) -> (i32, i32, i32) {
    %c0_i32 = arith.constant 0 : i32
    %c0_i32_0 = arith.constant 0 : i32
    %c0_i32_1 = arith.constant 0 : i32
    %c0_i32_2 = arith.constant 0 : i32
    return %c0_i32, %c0_i32_0, %c0_i32_1 : i32, i32, i32
  }
  func.func @transform_10(%arg0: i32) -> (i32, i32, i32) {
    %c0_i32 = arith.constant 0 : i32
    %c0_i32_0 = arith.constant 0 : i32
    %c0_i32_1 = arith.constant 0 : i32
    %c0_i32_2 = arith.constant 0 : i32
    return %c0_i32, %c0_i32_0, %c0_i32_1 : i32, i32, i32
  }
  func.func @transform_11(%arg0: i32) -> (i32, i32, i32) {
    %c0_i32 = arith.constant 0 : i32
    %c0_i32_0 = arith.constant 0 : i32
    %c0_i32_1 = arith.constant 0 : i32
    %c0_i32_2 = arith.constant 0 : i32
    return %c0_i32, %c0_i32_0, %c0_i32_1 : i32, i32, i32
  }
  func.func @transform_12(%arg0: i32) -> (i32, i32, i32) {
    %c0_i32 = arith.constant 0 : i32
    %c0_i32_0 = arith.constant 0 : i32
    %c0_i32_1 = arith.constant 0 : i32
    return %arg0, %c0_i32, %c0_i32_0 : i32, i32, i32
  }
}

</mosaic_0001>

<bundles_post_ra>
// kernel: st_joint_att33.1
= control target key start
LH: loop header
LB: loop body
LE: loop exit
PB: predicated region body
PF: predicated region fallthrough
CT: control target
= control target key end

     0   :  { %s3838_s21 = smov 0   ;;  %s5010_s0 = inlined_call_operand.vmem [shape: f32[2,32,400], index: 0, kind: input, shape index: {}]   ;;  %s5011_s1 = inlined_call_operand.vmem [shape: f32[400,16], index: 1, kind: input, shape index: {}]   ;;  %s5012_s2 = inlined_call_operand.vmem [shape: f32[400,25], index: 2, kind: input, shape index: {}]   ;;  %s5013_s3 = inlined_call_operand.vmem [shape: f32[16,400], index: 3, kind: input, shape index: {}]   ;;  %s5014_s4 = inlined_call_operand.vmem [shape: f32[25,400], index: 4, kind: input, shape index: {}]   ;;  %s5015_s5 = inlined_call_operand.vmem [shape: f32[400,25], index: 5, kind: input, shape index: {}]   ;;  %s5016_s6 = inlined_call_operand.vmem [shape: f32[8,32], index: 6, kind: input, shape index: {}]   ;;  %s5017_s7 = inlined_call_operand.vmem [shape: f32[8,1], index: 7, kind: input, shape index: {}]   ;;  %s5018_s8 = inlined_call_operand.vmem [shape: f32[2,32,8], index: 8, kind: input, shape index: {}]   ;;  %s5019_s9 = inlined_call_operand.vmem [shape: f32[2,32,1], index: 9, kind: input, shape index: {}]   ;;  %s5020_s10 = inlined_call_operand.vmem [shape: f32[3,25,25], index: 10, kind: input, shape index: {}]   ;;  %s5021_s11 = inlined_call_operand.vmem [shape: f32[3,1,25], index: 11, kind: input, shape index: {}]   ;;  %s5022_s12 = inlined_call_operand.vmem [shape: f32[2,32,400], index: 12, kind: output, shape index: {}]  }
   0x1 LB: > { %s3012_s22 = sadd.s32 4294967295, %s3766_s21   ;;  %p3016_p0 = scmp.ge.s32.totalorder %s3766_s21, 1  ;;  %s3766_s21 = sphi %s3838_s21, %s22_s21  }
   0x2   : > { %p362_p1 = scmp.lt.s32.totalorder %s3766_s21, 3 }
   0x4   : > { %p363_p2 = pnand %p3016_p0, %p362_p1 }
   0x5   : > { %v446_v0 = vld [vmem:[%s5011_s1 + $0x80] sm:$0xff] (!%p363_p2)  ;;  %v447_v1 = vld [vmem:[%s5011_s1 + $0x88] sm:$0xff] (!%p363_p2)  ;;  %v3768_v3 = vmov (!%p363_p2), 0.0|0.0   ;;  %v448_v10 = vld [vmem:[%s5011_s1 + $0x90] sm:$0xff] (!%p363_p2)  ;;  %p3876_p3 = scmp.lt.s32.totalorder (!%p363_p2), %s3012_s22, 1  ;;  %vm643_vm0 = vcmask (!%p363_p2), 130048  }
   0x6   : > { %366 = sbr.rel (%p363_p2) target bundleno = 1246 (0x4de), region = 68  ;;  %v462_v2 = vld [vmem:[%s5011_s1 + $0x100] sm:$0xff] (!%p363_p2)  ;;  %3416 = vmatprep.subr.bf16.mxu1 (!%p363_p2), %v3768_v3  ;;  %v3384_v4 = vpack.c.bf16 (!%p363_p2), %v447_v1, %v446_v0  ;;  %v463_v5 = vld [vmem:[%s5011_s1 + $0x108] sm:$0xff] (!%p363_p2)  ;;  %v449_v11 = vld [vmem:[%s5011_s1 + $0x98] sm:$0xff] (!%p363_p2)  ;;  %vm3769_vm1 = vmmov (!%p363_p2), 0   ;;  %vm1209_vm2 = vcmask (!%p363_p2), 261120  }
   0x7   : > { %v430_v6 = vld [vmem:[%s5011_s1] sm:$0xff] (!%p363_p2)  ;;  %v431_v7 = vld [vmem:[%s5011_s1 + $0x8] sm:$0xff] (!%p363_p2)  ;;  %v3417_v8 = vpack.c.bf16 (!%p363_p2), %v463_v5, %v462_v2  ;;  %v464_v12 = vld [vmem:[%s5011_s1 + $0x110] sm:$0xff] (!%p363_p2)  ;;  %v3388_v13 = vpack.c.bf16 (!%p363_p2), %v449_v11, %v448_v10  ;;  %vm1383_vm3 = vcmask (!%p363_p2), 64512   ;;  %vm1659_vm4 = vcmask (!%p363_p2), 1040384  }
   0x8   : > { %v3386_v9 = vpack.c.bf16 (!%p363_p2), %v431_v7, %v430_v6  ;;  %3385 = vmatprep.subr.bf16.mxu0 (!%p363_p2), %v3384_v4  ;;  %v465_v14 = vld [vmem:[%s5011_s1 + $0x118] sm:$0xff] (!%p363_p2)  ;;  %v432_v15 = vld [vmem:[%s5011_s1 + $0x10] sm:$0xff] (!%p363_p2)  ;;  %v450_v19 = vld [vmem:[%s5011_s1 + $0xa0] sm:$0xff] (!%p363_p2)  ;;  %vm3772_vm5 = vmmov (!%p363_p2), 1   ;;  %vm1652_vm7 = vcmask (!%p363_p2), 203776  }
   0x9   : > { %v433_v16 = vld [vmem:[%s5011_s1 + $0x18] sm:$0xff] (!%p363_p2)  ;;  %3418 = vmatpush1.bf16.msra.mxu1 (!%p363_p2), %v3417_v8  ;;  %v3420_v17 = vpack.c.bf16 (!%p363_p2), %v465_v14, %v464_v12  ;;  %v451_v20 = vld [vmem:[%s5011_s1 + $0xa8] sm:$0xff] (!%p363_p2)  ;;  %v466_v21 = vld [vmem:[%s5011_s1 + $0x120] sm:$0xff] (!%p363_p2) }
   0xa   : > { %3387 = vmatpush3.bf16.msra.mxu0 (!%p363_p2), %v3386_v9  ;;  %v3390_v18 = vpack.c.bf16 (!%p363_p2), %v433_v16, %v432_v15  ;;  %3419 = vmatprep.subr.bf16.mxu1 (!%p363_p2), %v3768_v3  ;;  %v3392_v22 = vpack.c.bf16 (!%p363_p2), %v451_v20, %v450_v19  ;;  %v467_v23 = vld [vmem:[%s5011_s1 + $0x128] sm:$0xff] (!%p363_p2)  ;;  %v434_v24 = vld [vmem:[%s5011_s1 + $0x20] sm:$0xff] (!%p363_p2)  ;;  %v452_v26 = vld [vmem:[%s5011_s1 + $0xb0] sm:$0xff] (!%p363_p2) }
   0xb   : > { %3389 = vmatprep.subr.bf16.mxu0 (!%p363_p2), %v3388_v13  ;;  %v435_v25 = vld [vmem:[%s5011_s1 + $0x28] sm:$0xff] (!%p363_p2)  ;;  %v453_v27 = vld [vmem:[%s5011_s1 + $0xb8] sm:$0xff] (!%p363_p2)  ;;  %v3423_v28 = vpack.c.bf16 (!%p363_p2), %v467_v23, %v466_v21  ;;  %v468_v30 = vld [vmem:[%s5011_s1 + $0x130] sm:$0xff] (!%p363_p2) }
   0xc   : > { %v3394_v29 = vpack.c.bf16 (!%p363_p2), %v435_v25, %v434_v24  ;;  %v3396_v31 = vpack.c.bf16 (!%p363_p2), %v453_v27, %v452_v26  ;;  %v469_v32 = vld [vmem:[%s5011_s1 + $0x138] sm:$0xff] (!%p363_p2)  ;;  %v436_v33 = vld [vmem:[%s5011_s1 + $0x30] sm:$0xff] (!%p363_p2)  ;;  %v454_v35 = vld [vmem:[%s5011_s1 + $0xc0] sm:$0xff] (!%p363_p2) }
   0xd   : > { %s5027_s22 = smov (!%p3876_p3, %s3012_s22), 1  ;;  %3421 = vmatpush1.bf16.msra.mxu1 %v3420_v17  ;;  %v437_v34 = vld [vmem:[%s5011_s1 + $0x38] sm:$0xff]  ;;  %v455_v36 = vld [vmem:[%s5011_s1 + $0xc8] sm:$0xff]  ;;  %v3426_v37 = vpack.c.bf16 %v469_v32, %v468_v30  ;;  %v470_v39 = vld [vmem:[%s5011_s1 + $0x140] sm:$0xff] }
   0xe   : > { %3391 = vmatpush3.bf16.msra.mxu0 %v3390_v18  ;;  %3422 = vmatprep.subr.bf16.mxu1 %v3768_v3  ;;  %s3120_s29 = sshll.u32 %s5027_s22, 7  ;;  %v3398_v38 = vpack.c.bf16 %v437_v34, %v436_v33  ;;  %v3400_v40 = vpack.c.bf16 %v455_v36, %v454_v35  ;;  %v471_v41 = vld [vmem:[%s5011_s1 + $0x148] sm:$0xff]  ;;  %v438_v42 = vld [vmem:[%s5011_s1 + $0x40] sm:$0xff]  ;;  %v456_v44 = vld [vmem:[%s5011_s1 + $0xd0] sm:$0xff] }
   0xf   : > { %3393 = vmatprep.subr.bf16.mxu0 %v3392_v22  ;;  %v439_v43 = vld [vmem:[%s5011_s1 + $0x48] sm:$0xff]  ;;  %s3958_s23 = scalar_lea.vmem %s5010_s0, %s3120_s29  ;;  %v457_v45 = vld [vmem:[%s5011_s1 + $0xd8] sm:$0xff]  ;;  %v472_v46 = vld [vmem:[%s5011_s1 + $0x150] sm:$0xff]  ;;  %v3429_v47 = vpack.c.bf16 %v471_v41, %v470_v39  ;;  %s4965_s24 = scalar_lea.vmem %s5022_s12, %s3120_s29 }
  0x10   : > { %v3402_v48 = vpack.c.bf16 %v439_v43, %v438_v42  ;;  %v473_v49 = vld [vmem:[%s5011_s1 + $0x158] sm:$0xff]  ;;  %v440_v50 = vld [vmem:[%s5011_s1 + $0x50] sm:$0xff]  ;;  %v3976_v51 = vld [vmem:[%s3958_s23 + $0x8] sm:$0xff]  ;;  %v3404_v52 = vpack.c.bf16 %v457_v45, %v456_v44 }
  0x11   : > { %3424 = vmatpush1.bf16.msra.mxu1 %v3423_v28  ;;  %v441_v53 = vld [vmem:[%s5011_s1 + $0x58] sm:$0xff]  ;;  %v3986_v55 = vld [vmem:[%s3958_s23 + $0x28] sm:$0xff]  ;;  %v458_v56 = vld [vmem:[%s5011_s1 + $0xe0] sm:$0xff]  ;;  %720 = vmatprep.mubr.f32.mxu0 %v3976_v51  ;;  %v3432_v0 = vpack.c.bf16 %v473_v49, %v472_v46 }
  0x12   : > { %3395 = vmatpush3.bf16.msra.mxu0 %v3394_v29  ;;  %3425 = vmatprep.subr.bf16.mxu1 %v3768_v3  ;;  %v3983_v54 = vld [vmem:[%s3958_s23 + $0x18] sm:$0xff]  ;;  %v459_v57 = vld [vmem:[%s5011_s1 + $0xe8] sm:$0xff]  ;;  %v1005_v58 = vadd.f32 %v3986_v55, %v3976_v51  ;;  %v474_v59 = vld [vmem:[%s5011_s1 + $0x160] sm:$0xff]  ;;  %v3406_v1 = vpack.c.bf16 %v441_v53, %v440_v50 }
  0x13   : > { %3397 = vmatprep.subr.bf16.mxu0 %v3396_v31  ;;  %3039 = vmatprep.mubr.msk.f32.mxu1 %vm643_vm0, %v3983_v54  ;;  %v475_v60 = vld [vmem:[%s5011_s1 + $0x168] sm:$0xff]  ;;  %v4006_v61 = vld [vmem:[%s3958_s23] sm:$0xff]  ;;  %v1023_v62 = vsel %vm643_vm0, %v3983_v54, 0.0  ;;  %v4022_v6 = vld [vmem:[%s3958_s23 + $0x38] sm:$0xff]  ;;  %v3408_v7 = vpack.c.bf16 %v459_v57, %v458_v56 }
  0x14   : > { %v4011_v63 = vld [vmem:[%s3958_s23 + $0x20] sm:$0xff]  ;;  %v443_v4 = vld [vmem:[%s5011_s1 + $0x68] sm:$0xff]  ;;  %v4026_v8 = vld [vmem:[%s3958_s23 + $0x10] sm:$0xff]  ;;  %v1024_v9 = vsel %vm643_vm0, %v4022_v6, 0.0  ;;  %v3435_v21 = vpack.c.bf16 %v475_v60, %v474_v59 }
  0x15   : > { %3427 = vmatpush1.bf16.msra.mxu1 %v3426_v37  ;;  %v442_v2 = vld [vmem:[%s5011_s1 + $0x60] sm:$0xff]  ;;  %v996_v5 = vadd.f32 %v4011_v63, %v4006_v61  ;;  %v4031_v10 = vld [vmem:[%s3958_s23 + $0x48] sm:$0xff]  ;;  %v4034_v11 = vld [vmem:[%s3958_s23 + $0x30] sm:$0xff]  ;;  %v1025_v14 = vadd.f32 %v1024_v9, %v1023_v62 }
  0x16   : > { %3399 = vmatpush3.bf16.msra.mxu0 %v3398_v38  ;;  %3428 = vmatprep.subr.bf16.mxu1 %v3768_v3  ;;  %v460_v12 = vld [vmem:[%s5011_s1 + $0xf0] sm:$0xff]  ;;  %v461_v13 = vld [vmem:[%s5011_s1 + $0xf8] sm:$0xff]  ;;  %v1006_v15 = vadd.f32 %v1005_v58, %v4031_v10  ;;  %v1014_v16 = vadd.f32 %v4034_v11, %v4026_v8  ;;  %v4046_v17 = vld [vmem:[%s3958_s23 + $0x40] sm:$0xff]  ;;  %v3410_v22 = vpack.c.bf16 %v443_v4, %v442_v2 }
  0x17   : > { %3401 = vmatprep.subr.bf16.mxu0 %v3400_v40  ;;  %v476_v18 = vld [vmem:[%s5011_s1 + $0x170] sm:$0xff]  ;;  %v477_v19 = vld [vmem:[%s5011_s1 + $0x178] sm:$0xff]  ;;  %v997_v20 = vadd.f32 %v996_v5, %v4046_v17  ;;  %v4059_v24 = vld [vmem:[%s3958_s23 + $0x68] sm:$0xff]  ;;  %v3412_v26 = vpack.c.bf16 %v461_v13, %v460_v12 }
  0x18   : > { %v4056_v23 = vld [vmem:[%s3958_s23 + $0x58] sm:$0xff]  ;;  %v4062_v25 = vld [vmem:[%s3958_s23 + $0x50] sm:$0xff]  ;;  %v4074_v30 = vadd.f32 %v1006_v15, %v4059_v24  ;;  %v4078_v32 = vld [vmem:[%s3958_s23 + $0x60] sm:$0xff]  ;;  %v3438_v39 = vpack.c.bf16 %v477_v19, %v476_v18 }
  0x19   : > { %3430 = vmatpush1.bf16.msra.mxu1 %v3429_v47  ;;  %v444_v27 = vld [vmem:[%s5011_s1 + $0x70] sm:$0xff]  ;;  %v445_v28 = vld [vmem:[%s5011_s1 + $0x78] sm:$0xff]  ;;  %v1026_v29 = vsel %vm643_vm0, %v4056_v23, 0.0  ;;  %v1015_v31 = vadd.f32 %v1014_v16, %v4062_v25  ;;  %v496_v33 = vld [vmem:[%s5012_s2 + $0x80] sm:$0xff]  ;;  %v4087_v36 = vadd.f32 %v997_v20, %v4078_v32 }
  0x1a   : > { %3403 = vmatpush3.bf16.msra.mxu0 %v3402_v48  ;;  %3431 = vmatprep.subr.bf16.mxu1 %v3768_v3  ;;  %v497_v34 = vld [vmem:[%s5012_s2 + $0x88] sm:$0xff]  ;;  %v1027_v35 = vadd.f32 %v1026_v29, %v1025_v14  ;;  %v4090_v37 = vld [vmem:[%s3958_s23 + $0x78] sm:$0xff]  ;;  %v4093_v38 = vld [vmem:[%s3958_s23 + $0x70] sm:$0xff]  ;;  %v3414_v40 = vpack.c.bf16 %v445_v28, %v444_v27 }
  0x1b   : > { %3405 = vmatprep.subr.bf16.mxu0 %v3404_v52  ;;  %v1028_v41 = vsel %vm643_vm0, %v4090_v37, 0.0  ;;  %v4098_v42 = vadd.f32 %v1015_v31, %v4093_v38  ;;  %v478_v43 = vld [vmem:[%s5011_s1 + $0x180] sm:$0xff]  ;;  %v479_v44 = vld [vmem:[%s5011_s1 + $0x188] sm:$0xff]  ;;  %v3443_v45 = vpack.c.bf16 %v497_v34, %v496_v33  ;;  %v498_v49 = vld [vmem:[%s5012_s2 + $0x90] sm:$0xff] }
  0x1c   : > { %v4107_v46 = vadd.f32 %v1028_v41, %v1027_v35  ;;  %v480_v47 = vld [vmem:[%s5012_s2] sm:$0xff]  ;;  %v481_v48 = vld [vmem:[%s5012_s2 + $0x8] sm:$0xff]  ;;  %v499_v50 = vld [vmem:[%s5012_s2 + $0x98] sm:$0xff]  ;;  %v3441_v52 = vpack.c.bf16 %v479_v44, %v478_v43 }
  0x1d   : > { %3433 = vmatpush1.bf16.msra.mxu1 %v3432_v0  ;;  %v3445_v53 = vpack.c.bf16 %v481_v48, %v480_v47  ;;  %v512_v56 = vld [vmem:[%s5012_s2 + $0x100] sm:$0xff]  ;;  %v513_v57 = vld [vmem:[%s5012_s2 + $0x108] sm:$0xff]  ;;  %v3447_v58 = vpack.c.bf16 %v499_v50, %v498_v49  ;;  %v482_v59 = vld [vmem:[%s5012_s2 + $0x10] sm:$0xff] }
  0x1e   : > { %3407 = vmatpush3.bf16.msra.mxu0 %v3406_v1  ;;  %3434 = vmatprep.subr.bf16.mxu1 %v3768_v3  ;;  %v483_v60 = vld [vmem:[%s5012_s2 + $0x18] sm:$0xff]  ;;  %v3476_v62 = vpack.c.bf16 %v513_v57, %v512_v56  ;;  %v514_v0 = vld [vmem:[%s5012_s2 + $0x110] sm:$0xff]  ;;  %v500_v4 = vld [vmem:[%s5012_s2 + $0xa0] sm:$0xff] }
  0x1f   : > { %3409 = vmatprep.subr.bf16.mxu0 %v3408_v7  ;;  %v515_v1 = vld [vmem:[%s5012_s2 + $0x118] sm:$0xff]  ;;  %v3449_v2 = vpack.c.bf16 %v483_v60, %v482_v59  ;;  %v501_v5 = vld [vmem:[%s5012_s2 + $0xa8] sm:$0xff]  ;;  %v484_v7 = vld [vmem:[%s5012_s2 + $0x20] sm:$0xff] }
  0x20   : > { %v485_v9 = vld [vmem:[%s5012_s2 + $0x28] sm:$0xff]  ;;  %v3479_v12 = vpack.c.bf16 %v515_v1, %v514_v0  ;;  %v3451_v13 = vpack.c.bf16 %v501_v5, %v500_v4  ;;  %v516_v14 = vld [vmem:[%s5012_s2 + $0x120] sm:$0xff]  ;;  %v502_v18 = vld [vmem:[%s5012_s2 + $0xb0] sm:$0xff] }
  0x21   : > { %3436 = vmatpush1.bf16.msra.mxu1 %v3435_v21  ;;  %v517_v15 = vld [vmem:[%s5012_s2 + $0x128] sm:$0xff]  ;;  %v3453_v16 = vpack.c.bf16 %v485_v9, %v484_v7  ;;  %v503_v19 = vld [vmem:[%s5012_s2 + $0xb8] sm:$0xff]  ;;  %v486_v20 = vld [vmem:[%s5012_s2 + $0x30] sm:$0xff] }
  0x22   : > { %3411 = vmatpush3.bf16.msra.mxu0 %v3410_v22  ;;  %3437 = vmatprep.subr.bf16.mxu1 %v3768_v3  ;;  %v487_v21 = vld [vmem:[%s5012_s2 + $0x38] sm:$0xff]  ;;  %v3482_v22 = vpack.c.bf16 %v517_v15, %v516_v14  ;;  %v505_v27 = vld [vmem:[%s5012_s2 + $0xc8] sm:$0xff]  ;;  %v3455_v28 = vpack.c.bf16 %v503_v19, %v502_v18  ;;  %v518_v29 = vld [vmem:[%s5012_s2 + $0x130] sm:$0xff] }
  0x23   : > { %3413 = vmatprep.subr.bf16.mxu0 %v3412_v26  ;;  %v504_v26 = vld [vmem:[%s5012_s2 + $0xc0] sm:$0xff]  ;;  %v519_v31 = vld [vmem:[%s5012_s2 + $0x138] sm:$0xff]  ;;  %v3457_v33 = vpack.c.bf16 %v487_v21, %v486_v20  ;;  %v506_v41 = vld [vmem:[%s5012_s2 + $0xd0] sm:$0xff] }
  0x24   : > { %v3459_v34 = vpack.c.bf16 %v505_v27, %v504_v26  ;;  %v488_v35 = vld [vmem:[%s5012_s2 + $0x40] sm:$0xff]  ;;  %v507_v43 = vld [vmem:[%s5012_s2 + $0xd8] sm:$0xff]  ;;  %v490_v49 = vld [vmem:[%s5012_s2 + $0x50] sm:$0xff] }
  0x25   : > { %3439 = vmatpush1.bf16.msra.mxu1 %v3438_v39  ;;  %v489_v39 = vld [vmem:[%s5012_s2 + $0x48] sm:$0xff]  ;;  %v520_v44 = vld [vmem:[%s5012_s2 + $0x140] sm:$0xff]  ;;  %v3463_v48 = vpack.c.bf16 %v507_v43, %v506_v41  ;;  %v491_v50 = vld [vmem:[%s5012_s2 + $0x58] sm:$0xff] }
  0x26   : > { %3415 = vmatpush3.bf16.msra.mxu0 %v3414_v40  ;;  %3440 = vmatprep.subr.bf16.mxu1 %v3768_v3  ;;  %v3485_v40 = vpack.c.bf16 %v519_v31, %v518_v29  ;;  %v3461_v47 = vpack.c.bf16 %v489_v39, %v488_v35  ;;  %v522_v56 = vld [vmem:[%s5012_s2 + $0x150] sm:$0xff]  ;;  %v523_v57 = vld [vmem:[%s5012_s2 + $0x158] sm:$0xff]  ;;  %v492_v60 = vld [vmem:[%s5012_s2 + $0x60] sm:$0xff] }
  0x27   : > { %3444 = vmatprep.subr.bf16.mxu0 %v3443_v45  ;;  %v521_v45 = vld [vmem:[%s5012_s2 + $0x148] sm:$0xff]  ;;  %v510_v0 = vld [vmem:[%s5012_s2 + $0xf0] sm:$0xff]  ;;  %v511_v1 = vld [vmem:[%s5012_s2 + $0xf8] sm:$0xff] }
  0x28   : > { %v525_v4 = vld [vmem:[%s5012_s2 + $0x168] sm:$0xff]  ;;  %v3471_v7 = vpack.c.bf16 %v511_v1, %v510_v0  ;;  %v494_v9 = vld [vmem:[%s5012_s2 + $0x70] sm:$0xff]  ;;  %v570_v14 = vld [vmem:[%s5015_s5 + $0x80] sm:$0xff] }
  0x29   : > { %721 = vmatmul.mubr.f32.vlgmr.msra.gmra.mrb[0].mxu0 %v4006_v61  ;;  %3442 = vmatpush1.bf16.msra.mxu1 %v3441_v52  ;;  %v3488_v52 = vpack.c.bf16 %v521_v45, %v520_v44  ;;  %v571_v15 = vld [vmem:[%s5015_s5 + $0x88] sm:$0xff]  ;;  %v527_v18 = vld [vmem:[%s5012_s2 + $0x178] sm:$0xff]  ;;  %v554_v21 = vld [vmem:[%s5015_s5] sm:$0xff] }
  0x2a   : > { %725 = vmatprep.mubr.f32.mxu0 %v3986_v55  ;;  %3475 = vmatprep.subr.bf16.mxu1 %v3768_v3  ;;  %v3502_v20 = vpack.c.bf16 %v571_v15, %v570_v14  ;;  %v572_v27 = vld [vmem:[%s5015_s5 + $0x90] sm:$0xff]  ;;  %v528_v29 = vld [vmem:[%s5012_s2 + $0x180] sm:$0xff]  ;;  %v529_v31 = vld [vmem:[%s5012_s2 + $0x188] sm:$0xff] }
  0x2b   : > { %3446 = vmatpush3.bf16.msra.mxu0 %v3445_v53  ;;  %v508_v53 = vld [vmem:[%s5012_s2 + $0xe0] sm:$0xff]  ;;  %v556_v35 = vld [vmem:[%s5015_s5 + $0x10] sm:$0xff]  ;;  %v557_v39 = vld [vmem:[%s5015_s5 + $0x18] sm:$0xff] }
  0x2c   : > { %3448 = vmatprep.subr.bf16.mxu0 %v3447_v58  ;;  %806 = vmatmul.mubr.f32.vlgmr.msra.gmra.mrb[0].mxu1 %v4026_v8  ;;  %v3465_v58 = vpack.c.bf16 %v491_v50, %v490_v49  ;;  %v574_v41 = vld [vmem:[%s5015_s5 + $0xa0] sm:$0xff]  ;;  %v575_v43 = vld [vmem:[%s5015_s5 + $0xa8] sm:$0xff]  ;;  %v3508_v44 = vpack.c.bf16 %v557_v39, %v556_v35  ;;  %v1017_v35 = vrot.slane %v4098_v42, 4  ;;  %vm4595_vm6 = vmpackc.low %vm1659_vm4, %vm3772_vm5 }
  0x2d   : > { %726 = vmatmul.mubr.f32.gmra.mrb[2].mxu0 %v4011_v63  ;;  %3477 = vmatpush1.bf16.msra.mxu1 %v3476_v62  ;;  %v3491_v62 = vpack.c.bf16 %v523_v57, %v522_v56  ;;  %v3510_v45 = vpack.c.bf16 %v575_v43, %v574_v41  ;;  %v563_v56 = vld [vmem:[%s5015_s5 + $0x48] sm:$0xff]  ;;  %v590_v41 = vld [vmem:[%s5015_s5 + $0x120] sm:$0xff] }
  0x2e   : > { %3040 = vmatprep.mubr.msk.f32.mxu1 %vm643_vm0, %v4022_v6  ;;  %730 = vmatprep.mubr.f32.mxu0 %v4031_v10  ;;  %v591_v43 = vld [vmem:[%s5015_s5 + $0x128] sm:$0xff] }
  0x2f   : > { %3478 = vmatprep.subr.bf16.mxu1 %v3768_v3  ;;  %3450 = vmatpush3.bf16.msra.mxu0 %v3449_v2  ;;  %v524_v2 = vld [vmem:[%s5012_s2 + $0x160] sm:$0xff] }
  0x30   : > { %811 = vmatmul.mubr.f32.gmra.mrb[2].mxu1 %v4034_v11  ;;  %3452 = vmatprep.subr.bf16.mxu0 %v3451_v13  ;;  %v3494_v13 = vpack.c.bf16 %v525_v4, %v524_v2 }
  0x31   : > { %731 = vmatmul.mubr.f32.gmra.mrb[4].mxu0 %v4046_v17  ;;  %3480 = vmatpush1.bf16.msra.mxu1 %v3479_v12  ;;  %v495_v12 = vld [vmem:[%s5012_s2 + $0x78] sm:$0xff] }
  0x32   : > { %3041 = vmatprep.mubr.msk.f32.mxu1 %vm643_vm0, %v4056_v23  ;;  %735 = vmatprep.mubr.f32.mxu0 %v4059_v24  ;;  %v3473_v19 = vpack.c.bf16 %v495_v12, %v494_v9 }
  0x33   : > { %3481 = vmatprep.subr.bf16.mxu1 %v3768_v3  ;;  %3454 = vmatpush3.bf16.msra.mxu0 %v3453_v16  ;;  %v526_v16 = vld [vmem:[%s5012_s2 + $0x170] sm:$0xff] }
  0x34   : > { %816 = vmatmul.mubr.f32.gmra.mrb[4].mxu1 %v4062_v25  ;;  %3456 = vmatprep.subr.bf16.mxu0 %v3455_v28  ;;  %v3497_v26 = vpack.c.bf16 %v527_v18, %v526_v16  ;;  %v573_v28 = vld [vmem:[%s5015_s5 + $0x98] sm:$0xff]  ;;  %v584_v16 = vld [vmem:[%s5015_s5 + $0xf0] sm:$0xff] }
  0x35   : > { %736 = vmatmul.mubr.f32.gmra.mrb[6].mxu0 %v4078_v32  ;;  %3483 = vmatpush1.bf16.msra.mxu1 %v3482_v22  ;;  %v555_v22 = vld [vmem:[%s5015_s5 + $0x8] sm:$0xff]  ;;  %v585_v18 = vld [vmem:[%s5015_s5 + $0xf8] sm:$0xff] }
  0x36   : > { %3042 = vmatprep.mubr.msk.f32.mxu1 %vm643_vm0, %v4090_v37  ;;  %3484 = vmatprep.subr.bf16.mxu1 %v3768_v3 }
  0x37   : > { %3458 = vmatpush3.bf16.msra.mxu0 %v3457_v33  ;;  %890 = vmatprep.mubr.f32.mxu0 %v3976_v51  ;;  %v509_v51 = vld [vmem:[%s5012_s2 + $0xe8] sm:$0xff]  ;;  %v3504_v33 = vpack.c.bf16 %v555_v22, %v554_v21  ;;  %v569_v21 = vld [vmem:[%s5015_s5 + $0x78] sm:$0xff]  ;;  %v588_v22 = vld [vmem:[%s5015_s5 + $0x110] sm:$0xff] }
  0x38   : > { %821 = vmatmul.mubr.f32.gmra.mrb[6].mxu1 %v4093_v38  ;;  %3460 = vmatprep.subr.bf16.mxu0 %v3459_v34  ;;  %v3467_v59 = vpack.c.bf16 %v509_v51, %v508_v53  ;;  %v3506_v34 = vpack.c.bf16 %v573_v28, %v572_v27  ;;  %v561_v53 = vld [vmem:[%s5015_s5 + $0x38] sm:$0xff] }
  0x39   : > { %3486 = vmatpush1.bf16.msra.mxu1 %v3485_v40  ;;  %3043 = vmatprep.mubr.msk.f32.mxu1 %vm643_vm0, %v3983_v54  ;;  %v493_v54 = vld [vmem:[%s5012_s2 + $0x68] sm:$0xff]  ;;  %v3500_v40 = vpack.c.bf16 %v529_v31, %v528_v29  ;;  %v589_v29 = vld [vmem:[%s5015_s5 + $0x118] sm:$0xff] }
  0x3a   : > { %3487 = vmatprep.subr.bf16.mxu1 %v3768_v3  ;;  %v3469_v5 = vpack.c.bf16 %v493_v54, %v492_v60  ;;  %v1008_v60 = vrot.slane %v4074_v30, 4  ;;  %v3538_v31 = vpack.c.bf16 %v589_v29, %v588_v22  ;;  %v3026_v22 = vld [vmem:[%s5019_s9 + $0x28] sm:$0xff] }
  0x3b   : > { %3462 = vmatpush3.bf16.msra.mxu0 %v3461_v47  ;;  %v558_v47 = vld [vmem:[%s5015_s5 + $0x20] sm:$0xff] }
  0x3c   : > { %3464 = vmatprep.subr.bf16.mxu0 %v3463_v48  ;;  %v559_v48 = vld [vmem:[%s5015_s5 + $0x28] sm:$0xff] }
  0x3d   : > { %3489 = vmatpush1.bf16.msra.mxu1 %v3488_v52  ;;  %v3512_v49 = vpack.c.bf16 %v559_v48, %v558_v47  ;;  %v560_v52 = vld [vmem:[%s5015_s5 + $0x30] sm:$0xff]  ;;  %v1018_v47 = vadd.f32 %v1017_v35, %v4098_v42 }
  0x3e   : > { %3490 = vmatprep.subr.bf16.mxu1 %v3768_v3  ;;  %v592_v48 = vld [vmem:[%s5015_s5 + $0x130] sm:$0xff] }
  0x3f   : > { %3466 = vmatpush3.bf16.msra.mxu0 %v3465_v58  ;;  %v565_v58 = vld [vmem:[%s5015_s5 + $0x58] sm:$0xff] }
  0x40   : > { %3468 = vmatprep.subr.bf16.mxu0 %v3467_v59 }
  0x41   : > { %3492 = vmatpush1.bf16.msra.mxu1 %v3491_v62  ;;  %v1009_v62 = vadd.f32 %v1008_v60, %v4074_v30  ;;  %v567_v30 = vld [vmem:[%s5015_s5 + $0x68] sm:$0xff]  ;;  %v600_v60 = vld [vmem:[%s5015_s5 + $0x170] sm:$0xff] }
  0x42   : > { %3493 = vmatprep.subr.bf16.mxu1 %v3768_v3 }
  0x43   : > { %3470 = vmatpush3.bf16.msra.mxu0 %v3469_v5  ;;  %v1010_v1 = vrot.slane %v1009_v62, 2 }
  0x44   : > { %3472 = vmatprep.subr.bf16.mxu0 %v3471_v7  ;;  %v586_v7 = vld [vmem:[%s5015_s5 + $0x100] sm:$0xff] }
  0x45   : > { %3495 = vmatpush1.bf16.msra.mxu1 %v3494_v13  ;;  %v1011_v4 = vadd.f32 %v1010_v1, %v1009_v62  ;;  %v587_v13 = vld [vmem:[%s5015_s5 + $0x108] sm:$0xff] }
  0x46   : > { %3496 = vmatprep.subr.bf16.mxu1 %v3768_v3  ;;  %v3535_v14 = vpack.c.bf16 %v587_v13, %v586_v7  ;;  %v4510_v13 = vld [vmem:[%s5013_s3 + $0x38] sm:$0xff] }
  0x47   : > { %3474 = vmatpush3.bf16.msra.mxu0 %v3473_v19  ;;  %v1012_v15 = vrot.slane %v1011_v4, 1  ;;  %v3530_v19 = vpack.c.bf16 %v585_v18, %v584_v16  ;;  %v605_v18 = vld [vmem:[%s5017_s7] sm:$0xff] }
  0x48   : > { %3503 = vmatprep.subr.bf16.mxu0 %v3502_v20  ;;  %v568_v20 = vld [vmem:[%s5015_s5 + $0x70] sm:$0xff] }
  0x49   : > { %3498 = vmatpush1.bf16.msra.mxu1 %v3497_v26  ;;  %v1013_v26 = vadd.f32 %v1012_v15, %v1011_v4  ;;  %v3532_v28 = vpack.c.bf16 %v569_v21, %v568_v20  ;;  %v4516_v15 = vld [vmem:[%s5013_s3 + $0x30] sm:$0xff]  ;;  %v615_v20 = vld [vmem:[%s5019_s9] sm:$0xff]  ;;  %v618_v21 = vld [vmem:[%s5019_s9 + $0x18] sm:$0xff] }
  0x4a   : > { %891 = vmatmul.mubr.f32.vlgmr.msra.gmra.mrb[8].mxu0 %v4006_v61  ;;  %3499 = vmatprep.subr.bf16.mxu1 %v3768_v3  ;;  %v576_v61 = vld [vmem:[%s5015_s5 + $0xb0] sm:$0xff] }
  0x4b   : > { %895 = vmatprep.mubr.f32.mxu0 %v3986_v55  ;;  %3505 = vmatpush3.bf16.msra.mxu0 %v3504_v33  ;;  %v577_v55 = vld [vmem:[%s5015_s5 + $0xb8] sm:$0xff]  ;;  %v1037_v33 = vmul.f32 0.03125, %v1013_v26 }
  0x4c   : > { %3507 = vmatprep.subr.bf16.mxu0 %v3506_v34  ;;  %v3514_v50 = vpack.c.bf16 %v577_v55, %v576_v61  ;;  %v4417_v34 = vld [vmem:[%s5013_s3 + $0x8] sm:$0xff]  ;;  %v593_v61 = vld [vmem:[%s5015_s5 + $0x138] sm:$0xff]  ;;  %v1030_v55 = vrot.slane %v4107_v46, 4 }
  0x4d   : > { %3501 = vmatpush1.bf16.msra.mxu1 %v3500_v40  ;;  %v1041_v39 = vmul.f32 %v1037_v33, %v4417_v34  ;;  %v4425_v40 = vld [vmem:[%s5013_s3] sm:$0xff]  ;;  %v3028_v26 = vld [vmem:[%s5019_s9 + $0x38] sm:$0xff] }
  0x4e   : > { %896 = vmatmul.mubr.f32.gmra.mrb[10].mxu0 %v4011_v63  ;;  %3534 = vmatprep.subr.bf16.mxu1 %v3768_v3  ;;  %v578_v63 = vld [vmem:[%s5015_s5 + $0xc0] sm:$0xff] }
  0x4f   : > { %900 = vmatprep.mubr.f32.mxu0 %v4031_v10  ;;  %3509 = vmatpush3.bf16.msra.mxu0 %v3508_v44  ;;  %v3516_v10 = vpack.c.bf16 %v561_v53, %v560_v52  ;;  %v4453_v52 = vld [vmem:[%s5013_s3 + $0x20] sm:$0xff]  ;;  %v1019_v53 = vrot.slane %v1018_v47, 2 }
  0x50   : > { %976 = vmatmul.mubr.f32.vlgmr.msra.gmra.mrb[8].mxu1 %v4026_v8  ;;  %3511 = vmatprep.subr.bf16.mxu0 %v3510_v45  ;;  %v579_v8 = vld [vmem:[%s5015_s5 + $0xc8] sm:$0xff]  ;;  %v3541_v45 = vpack.c.bf16 %v591_v43, %v590_v41 }
  0x51   : > { %3044 = vmatprep.mubr.msk.f32.mxu1 %vm643_vm0, %v4022_v6  ;;  %v3518_v51 = vpack.c.bf16 %v579_v8, %v578_v63  ;;  %v562_v6 = vld [vmem:[%s5015_s5 + $0x40] sm:$0xff]  ;;  %3536 = vmatpush1.bf16.msra.mxu1 %v3535_v14 }
  0x52   : > { %901 = vmatmul.mubr.f32.gmra.mrb[12].mxu0 %v4046_v17  ;;  %v580_v17 = vld [vmem:[%s5015_s5 + $0xd0] sm:$0xff]  ;;  %3537 = vmatprep.subr.bf16.mxu1 %v3768_v3  ;;  %v594_v8 = vld [vmem:[%s5015_s5 + $0x140] sm:$0xff] }
  0x53   : > { %905 = vmatprep.mubr.f32.mxu0 %v4059_v24  ;;  %3513 = vmatpush3.bf16.msra.mxu0 %v3512_v49  ;;  %v3520_v24 = vpack.c.bf16 %v563_v56, %v562_v6  ;;  %v3544_v49 = vpack.c.bf16 %v593_v61, %v592_v48  ;;  %v1020_v56 = vadd.f32 %v1019_v53, %v1018_v47 }
  0x54   : > { %981 = vmatmul.mubr.f32.gmra.mrb[10].mxu1 %v4034_v11  ;;  %3515 = vmatprep.subr.bf16.mxu0 %v3514_v50  ;;  %v581_v11 = vld [vmem:[%s5015_s5 + $0xd8] sm:$0xff]  ;;  %v4447_v50 = vld [vmem:[%s5013_s3 + $0x28] sm:$0xff] }
  0x55   : > { %3045 = vmatprep.mubr.msk.f32.mxu1 %vm643_vm0, %v4056_v23  ;;  %v3522_v57 = vpack.c.bf16 %v581_v11, %v580_v17  ;;  %v564_v23 = vld [vmem:[%s5015_s5 + $0x50] sm:$0xff]  ;;  %3539 = vmatpush1.bf16.msra.mxu1 %v3538_v31  ;;  %v1045_v42 = vmul.f32 %v1037_v33, %v4447_v50  ;;  %v3770_v17 = vmov 0.0  }
  0x56   : > { %906 = vmatmul.mubr.f32.gmra.mrb[14].mxu0 %v4078_v32  ;;  %v3524_v59 = vpack.c.bf16 %v565_v58, %v564_v23  ;;  %3540 = vmatprep.subr.bf16.mxu1 %v3768_v3  ;;  %v596_v11 = vld [vmem:[%s5015_s5 + $0x150] sm:$0xff]  ;;  %v598_v23 = vld [vmem:[%s5015_s5 + $0x160] sm:$0xff]  ;;  %v599_v58 = vld [vmem:[%s5015_s5 + $0x168] sm:$0xff] }
  0x57   : > { %3517 = vmatpush3.bf16.msra.mxu0 %v3516_v10  ;;  %1118 = vmatprep.mubr.f32.mxu0 %v1041_v39  ;;  %v595_v10 = vld [vmem:[%s5015_s5 + $0x148] sm:$0xff] }
  0x58   : > { %986 = vmatmul.mubr.f32.gmra.mrb[12].mxu1 %v4062_v25  ;;  %3519 = vmatprep.subr.bf16.mxu0 %v3518_v51  ;;  %v999_v25 = vrot.slane %v4087_v36, 4  ;;  %v1031_v51 = vadd.f32 %v1030_v55, %v4107_v46  ;;  %v3547_v6 = vpack.c.bf16 %v595_v10, %v594_v8  ;;  %v597_v46 = vld [vmem:[%s5015_s5 + $0x158] sm:$0xff] }
  0x59   : > { %3046 = vmatprep.mubr.msk.f32.mxu1 %vm643_vm0, %v4090_v37  ;;  %v582_v37 = vld [vmem:[%s5015_s5 + $0xe0] sm:$0xff]  ;;  %3542 = vmatpush1.bf16.msra.mxu1 %v3541_v45 }
  0x5a   : > { %v1000_v32 = vadd.f32 %v999_v25, %v4087_v36  ;;  %v566_v36 = vld [vmem:[%s5015_s5 + $0x60] sm:$0xff]  ;;  %3543 = vmatprep.subr.bf16.mxu1 %v3768_v3  ;;  %v3553_v25 = vpack.c.bf16 %v599_v58, %v598_v23 }
  0x5b   : > { %3521 = vmatpush3.bf16.msra.mxu0 %v3520_v24  ;;  %v3528_v12 = vpack.c.bf16 %v567_v30, %v566_v36  ;;  %v1032_v24 = vrot.slane %v1031_v51, 2  ;;  %v4497_v30 = vld [vmem:[%s5013_s3 + $0x18] sm:$0xff] }
  0x5c   : > { %991 = vmatmul.mubr.f32.gmra.mrb[14].mxu1 %v4093_v38  ;;  %3523 = vmatprep.subr.bf16.mxu0 %v3522_v57  ;;  %v1001_v54 = vrot.slane %v1000_v32, 2  ;;  %v583_v38 = vld [vmem:[%s5015_s5 + $0xe8] sm:$0xff]  ;;  %v3550_v57 = vpack.c.bf16 %v597_v46, %v596_v11 }
  0x5d   : > { %v3526_v5 = vpack.c.bf16 %v583_v38, %v582_v37  ;;  %3545 = vmatpush1.bf16.msra.mxu1 %v3544_v49  ;;  %v602_v37 = vld [vmem:[%s5015_s5 + $0x180] sm:$0xff]  ;;  %v603_v38 = vld [vmem:[%s5015_s5 + $0x188] sm:$0xff] }
  0x5e   : > { %v1002_v0 = vadd.f32 %v1001_v54, %v1000_v32  ;;  %3546 = vmatprep.subr.bf16.mxu1 %v3768_v3  ;;  %v1033_v32 = vadd.f32 %v1032_v24, %v1031_v51  ;;  %v601_v54 = vld [vmem:[%s5015_s5 + $0x178] sm:$0xff]  ;;  %v604_v24 = vld [vmem:[%s5016_s6] sm:$0xff] }
  0x5f   : > { %3525 = vmatpush3.bf16.msra.mxu0 %v3524_v59  ;;  %v1021_v59 = vrot.slane %v1020_v56, 1 }
  0x60   : > { %v1003_v2 = vrot.slane %v1002_v0, 1  ;;  %3527 = vmatprep.subr.bf16.mxu0 %v3526_v5  ;;  %v1034_v1 = vrot.slane %v1033_v32, 1  ;;  %v3559_v5 = vpack.c.bf16 %v603_v38, %v602_v37 }
  0x61   : > { %3548 = vmatpush1.bf16.msra.mxu1 %v3547_v6  ;;  %v1022_v62 = vadd.f32 %v1021_v59, %v1020_v56 }
  0x62   : > { %v1004_v9 = vadd.f32 %v1003_v2, %v1002_v0  ;;  %3549 = vmatprep.subr.bf16.mxu1 %v3768_v3  ;;  %v3556_v0 = vpack.c.bf16 %v601_v54, %v600_v60  ;;  %v1035_v2 = vadd.f32 %v1034_v1, %v1033_v32 }
  0x63   : > { %3529 = vmatpush3.bf16.msra.mxu0 %v3528_v12  ;;  %v1038_v4 = vmul.f32 0.03125, %v1022_v62 }
  0x64   : > { %v1036_v27 = vmul.f32 0.03125, %v1004_v9  ;;  %3531 = vmatprep.subr.bf16.mxu0 %v3530_v19  ;;  %v1039_v36 = vmul.f32 0.03125, %v1035_v2  ;;  %v4503_v9 = vld [vmem:[%s5013_s3 + $0x10] sm:$0xff]  ;;  %v3771_v19 = vmov 0  }
  0x65   : > { %3551 = vmatpush1.bf16.msra.mxu1 %v3550_v57  ;;  %v1042_v12 = vmul.f32 %v1038_v4, %v4503_v9  ;;  %v1046_v16 = vmul.f32 %v1038_v4, %v4516_v15  ;;  %3694 = vset.pattern.permute.xlu0 %v3771_v19 }
  0x66   : > { %v1040_v44 = vmul.f32 %v1036_v27, %v4425_v40  ;;  %v1044_v63 = vmul.f32 %v1036_v27, %v4453_v52  ;;  %3552 = vmatprep.subr.bf16.mxu1 %v3768_v3  ;;  %v1043_v7 = vmul.f32 %v1039_v36, %v4497_v30  ;;  %v1047_v14 = vmul.f32 %v1039_v36, %v4510_v13 }
  0x67   : > { %3533 = vmatpush3.bf16.msra.mxu0 %v3532_v28  ;;  %3695 = vset.pattern.permute.xlu1 %v3771_v19 }
  0x68   : > { %3561 = vmatprep.subr.bf16.mxu0 %v3768_v3  ;;  %3047 = vmatprep.mubr.msk.f32.mxu1 %vm643_vm0, %v1043_v7 }
  0x69   : > { %3554 = vmatpush1.bf16.msra.mxu1 %v3553_v25  ;;  %1206 = vperm.xlu0 %3694, %v605_v18  }
  0x6a   : > { %1119 = vmatmul.mubr.f32.vlgmr.msra.gmra.mrb[16].mxu0 %v1040_v44  ;;  %3555 = vmatprep.subr.bf16.mxu1 %v3768_v3 }
  0x6b   : > { %1123 = vmatprep.mubr.f32.mxu0 %v1045_v42 }
  0x6d   : > { %3557 = vmatpush1.bf16.msra.mxu1 %v3556_v0  ;;  %1365 = vperm.xlu0 %3694, %v615_v20  }
  0x6e   : > { %1124 = vmatmul.mubr.f32.gmra.mrb[18].mxu0 %v1044_v63  ;;  %3558 = vmatprep.subr.bf16.mxu1 %v3768_v3 }
  0x6f   : > { %3304 = vmatprep.mubr.msk.f32.mxu0 %vm3769_vm1, %v3770_v17 }
  0x71   : > { %3560 = vmatpush1.bf16.msra.mxu1 %v3559_v5  ;;  %1380 = vperm.xlu0 %3694, %v618_v21  }
  0x74   : > { %1194 = vmatmul.mubr.f32.vlgmr.msra.gmra.mrb[16].mxu1 %v1042_v12 }
  0x75   : > { %3048 = vmatprep.mubr.msk.f32.mxu1 %vm643_vm0, %v1047_v14  ;;  %1512 = vperm.xlu0 %3694, %v3026_v22  }
  0x78   : > { %1199 = vmatmul.mubr.f32.gmra.mrb[18].mxu1 %v1046_v16 }
  0x79   : > { %1522 = vperm.xlu0 %3694, %v3028_v26  }
  0xfc   : > { %v3154_v27 = vpop.f32.mrb[0].mxu0 }
  0xfd   : > { %v3155_v28 = vpop.f32.mrb[1].mxu0 }
  0xfe   : > { %v3156_v29 = vadd.f32 %v3155_v28, %v3154_v27 }
  0xff   : > { %v807_v31 = vpop.f32.mrb[0].mxu1 }
 0x100   : > { %v3157_v33 = vpop.f32.mrb[2].mxu0  ;;  %v808_v35 = vadd.f32 %v3156_v29, %v807_v31  ;;  %v809_v39 = vpop.f32.mrb[1].mxu1 }
 0x101   : > { %v3158_v41 = vpop.f32.mrb[3].mxu0 }
 0x102   : > { %v3159_v43 = vadd.f32 %v3158_v41, %v3157_v33 }
 0x103   : > { %v812_v44 = vpop.f32.mrb[2].mxu1 }
 0x104   : > { %v3160_v45 = vpop.f32.mrb[4].mxu0  ;;  %v813_v47 = vadd.f32 %v3159_v43, %v812_v44  ;;  %v814_v61 = vpop.f32.mrb[3].mxu1 }
 0x105   : > { %v3161_v48 = vpop.f32.mrb[5].mxu0  ;;  %v617_v61 = vld [vmem:[%s5019_s9 + $0x10] sm:$0xff] }
 0x106   : > { %v3162_v55 = vadd.f32 %v3161_v48, %v3160_v45  ;;  %v3562_v49 = vpack.c.bf16 %v813_v47, %v808_v35  ;;  %v3021_v47 = vld [vmem:[%s5018_s8 + $0x20] sm:$0xff]  ;;  %v616_v48 = vld [vmem:[%s5019_s9 + $0x8] sm:$0xff] }
 0x107   : > { %v817_v53 = vpop.f32.mrb[4].mxu1  ;;  %3328 = vmatprep.mubr.msk.f32.mxu1 %vm1383_vm3, %v3021_v47  ;;  %1370 = vperm.xlu1 %3695, %v616_v48  }
 0x108   : > { %v3163_v42 = vpop.f32.mrb[6].mxu0  ;;  %3563 = vmatpush3.bf16.msra.mxu0 %v3562_v49  ;;  %v818_v8 = vadd.f32 %v3162_v55, %v817_v53  ;;  %v819_v10 = vpop.f32.mrb[5].mxu1  ;;  %v3025_v55 = vld [vmem:[%s5019_s9 + $0x20] sm:$0xff]  ;;  %v3027_v49 = vld [vmem:[%s5019_s9 + $0x30] sm:$0xff] }
 0x109   : > { %v3164_v63 = vpop.f32.mrb[7].mxu0  ;;  %3564 = vmatprep.subr.bf16.mxu0 %v3768_v3 }
 0x10a   : > { %v3165_v51 = vadd.f32 %v3164_v63, %v3163_v42  ;;  %v1207_v42 = vpop.permute.xlu0 %1206 }
 0x10b   : > { %v822_v6 = vpop.f32.mrb[6].mxu1  ;;  %1375 = vperm.xlu1 %3695, %v617_v61  }
 0x10c   : > { %v823_v56 = vadd.f32 %v3165_v51, %v822_v6  ;;  %v824_v11 = vpop.f32.mrb[7].mxu1 }
 0x10d   : > { %v625_v11 = vld [vmem:[%s5020_s10 + $0x8] sm:$0xff] }
 0x10e   : > { %v3565_v46 = vpack.c.bf16 %v823_v56, %v818_v8  ;;  %v624_v56 = vld [vmem:[%s5020_s10] sm:$0xff] }
 0x10f   : > { %1507 = vperm.xlu1 %3695, %v3025_v55  }
 0x110   : > { %3566 = vmatpush3.bf16.msra.mxu0 %v3565_v46 }
 0x111   : > { %3567 = vmatprep.subr.bf16.mxu0 %v3768_v3 }
 0x113   : > { %3305 = vmatmul.mubr.msk.f32.vlgmr.msra.gmra.mrb[20].mxu0 %vm1209_vm2, %v604_v24  ;;  %1517 = vperm.xlu1 %3695, %v3027_v49  }
 0x114   : > { %3315 = vmatprep.mubr.msk.f32.mxu0 %vm3769_vm1, %v3770_v17 }
 0x11d   : > { %v3198_v57 = vpop.f32.mrb[8].mxu0 }
 0x11e   : > { %v3199_v23 = vpop.f32.mrb[9].mxu0 }
 0x11f   : > { %v3200_v58 = vadd.f32 %v3199_v23, %v3198_v57  ;;  %v627_v57 = vld [vmem:[%s5020_s10 + $0x18] sm:$0x1] }
 0x121   : > { %v3201_v59 = vpop.f32.mrb[10].mxu0 }
 0x122   : > { %v3202_v25 = vpop.f32.mrb[11].mxu0 }
 0x123   : > { %v977_v32 = vpop.f32.mrb[8].mxu1  ;;  %v3203_v60 = vadd.f32 %v3202_v25, %v3201_v59  ;;  %v607_v59 = vld [vmem:[%s5018_s8 + $0x8] sm:$0xff]  ;;  %v608_v25 = vld [vmem:[%s5018_s8 + $0x10] sm:$0xff] }
 0x124   : > { %v4543_v54 = vadd.f32 %v3200_v58, %v977_v32  ;;  %v979_v62 = vpop.f32.mrb[9].mxu1  ;;  %v3573_v58 = vpack.c.bf16 %v625_v11, %v624_v56 }
 0x125   : > { %v3204_v0 = vpop.f32.mrb[12].mxu0  ;;  %v609_v62 = vld [vmem:[%s5018_s8 + $0x18] sm:$0xff] }
 0x126   : > { %v3205_v1 = vpop.f32.mrb[13].mxu0 }
 0x127   : > { %v982_v2 = vpop.f32.mrb[10].mxu1  ;;  %v3206_v4 = vadd.f32 %v3205_v1, %v3204_v0 }
 0x128   : > { %v4545_v37 = vadd.f32 %v3203_v60, %v982_v2  ;;  %v984_v38 = vpop.f32.mrb[11].mxu1 }
 0x129   : > { %v3207_v5 = vpop.f32.mrb[14].mxu0 }
 0x12a   : > { %v3568_v36 = vpack.c.bf16 %v4545_v37, %v4543_v54  ;;  %v3208_v7 = vpop.f32.mrb[15].mxu0 }
 0x12b   : > { %v987_v12 = vpop.f32.mrb[12].mxu1  ;;  %v3209_v14 = vadd.f32 %v3208_v7, %v3207_v5 }
 0x12c   : > { %v4549_v16 = vadd.f32 %v3206_v4, %v987_v12  ;;  %v989_v18 = vpop.f32.mrb[13].mxu1  ;;  %3569 = vmatpush3.bf16.msra.mxu0 %v3568_v36  ;;  %v3022_v12 = vld [vmem:[%s5018_s8 + $0x28] sm:$0xff] }
 0x12d   : > { %3570 = vmatprep.subr.bf16.mxu0 %v3768_v3  ;;  %v606_v3 = vld [vmem:[%s5018_s8] sm:$0xff]  ;;  %v3024_v18 = vld [vmem:[%s5018_s8 + $0x38] sm:$0xff] }
 0x12f   : > { %v992_v19 = vpop.f32.mrb[14].mxu1 }
 0x130   : > { %v4552_v20 = vadd.f32 %v3209_v14, %v992_v19  ;;  %v994_v21 = vpop.f32.mrb[15].mxu1  ;;  %v3023_v14 = vld [vmem:[%s5018_s8 + $0x30] sm:$0xff]  ;;  %v3029_v19 = vld [vmem:[%s5020_s10 + $0x20] sm:$0xff] }
 0x131   : > { %v3030_v21 = vld [vmem:[%s5020_s10 + $0x28] sm:$0xff] }
 0x132   : > { %v3571_v22 = vpack.c.bf16 %v4552_v20, %v4549_v16 }
 0x134   : > { %3572 = vmatpush3.bf16.msra.mxu0 %v3571_v22  ;;  %v3593_v22 = vpack.c.bf16 %v3030_v21, %v3029_v19 }
 0x137   : > { %3316 = vmatmul.mubr.msk.f32.vlgmr.msra.gmra.mrb[22].mxu0 %vm1209_vm2, %v604_v24  ;;  %v626_v24 = vld [vmem:[%s5020_s10 + $0x10] sm:$0xff] }
 0x138   : > { %3320 = vmatprep.mubr.msk.f32.mxu0 %vm1383_vm3, %v606_v3  ;;  %v3577_v32 = vpack.c.bf16 %v627_v57, %v626_v24  ;;  %v1366_v3 = vpop.permute.xlu0 %1365 }
 0x13c   : > { %v1381_v47 = vpop.permute.xlu0 %1380 }
 0x13d   : > { %v3242_v26 = vpop.f32.mrb[16].mxu0 }
 0x13e   : > { %v3243_v27 = vpop.f32.mrb[17].mxu0 }
 0x13f   : > { %v3244_v28 = vadd.f32 %v3243_v27, %v3242_v26  ;;  %v3033_v26 = vld [vmem:[%s5020_s10 + $0x40] sm:$0xff]  ;;  %v3034_v27 = vld [vmem:[%s5020_s10 + $0x48] sm:$0xff] }
 0x141   : > { %v3245_v29 = vpop.f32.mrb[18].mxu0 }
 0x142   : > { %v3246_v31 = vpop.f32.mrb[19].mxu0 }
 0x143   : > { %v3247_v33 = vadd.f32 %v3246_v31, %v3245_v29  ;;  %v3035_v29 = vld [vmem:[%s5020_s10 + $0x50] sm:$0xff]  ;;  %v3617_v31 = vpack.c.bf16 %v4510_v13, %v4497_v30  ;;  %v4674_v30 = vld [vmem:[%s5021_s11] ss:$0 sm:$0xff] }
 0x147   : > { %v1195_v35 = vpop.f32.mrb[16].mxu1 }
 0x148   : > { %v1196_v39 = vadd.f32 %v3244_v28, %v1195_v35  ;;  %v1197_v41 = vpop.f32.mrb[17].mxu1  ;;  %v3603_v28 = vpack.c.bf16 %v3034_v27, %v3033_v26  ;;  %v546_v26 = vld [vmem:[%s5014_s4 + $0x40] sm:$0xff] }
 0x149   : > { %v550_v27 = vld [vmem:[%s5014_s4 + $0x60] sm:$0x1] }
 0x14b   : > { %v1200_v43 = vpop.f32.mrb[18].mxu1 }
 0x14c   : > { %v1201_v44 = vadd.f32 %v3247_v33, %v1200_v43  ;;  %v1202_v45 = vpop.f32.mrb[19].mxu1 }
 0x186   : > { %v1371_v33 = vpop.permute.xlu1 %1370 }
 0x18a   : > { %v1376_v45 = vpop.permute.xlu1 %1375 }
 0x1e6   : > { %v1279_v53 = vpop.f32.mrb[20].mxu0 }
 0x1e7   : > { %v1280_v63 = vadd.f32 %v1279_v53, %v1207_v42  ;;  %v3306_v8 = vpop.f32.mrb[21].mxu0 }
 0x1e9   : > { %v1283_v10 = vadd.f32 3.0, %v1280_v63 }
 0x1eb   : > { %v1284_v51 = vmax.f32 %v1283_v10, 0.0 }
 0x1ed   : > { %v1285_v6 = vmin.f32 %v1284_v51, 6.0 }
 0x1ef   : > { %v1286_v46 = vmul.f32 0.16666667, %v1285_v6 }
 0x1f1   : > { %v1287_v23 = vmul.f32 %v1286_v46, %v1280_v63 }
 0x1f3   : > { %3318 = vmatprep.subr.mxu0 %v1287_v23 }
 0x1f4   : > { %3319 = vmatpush3.msra.mxu0 %v1287_v23 }
 0x1f5   : > { %3321 = vmatmul.mubr.msk.f32.vlgmr.msra.gmra.mrb[24].mxu0 %vm1383_vm3, %v607_v59  ;;  %3574 = vmatprep.subr.bf16.mxu0 %v3573_v58 }
 0x1f6   : > { %3576 = vmatpush3.bf16.msra.mxu0 %v3573_v58  ;;  %3323 = vmatprep.mubr.msk.f32.mxu0 %vm1383_vm3, %v608_v25 }
 0x1f7   : > { %3579 = vmatprep.subr.msk.bf16.mxu0 %vm4595_vm6, %v3577_v32 }
 0x1f9   : > { %3324 = vmatmul.mubr.msk.f32.gmra.mrb[26].mxu0 %vm1383_vm3, %v609_v62 }
 0x1fa   : > { %3582 = vmatpush3.bf16.msk.msra.mxu0 %vm4595_vm6, %v3577_v32  ;;  %3342 = vmatprep.mubr.msk.f32.mxu0 %vm1652_vm7, %v1196_v39 }
 0x1fb   : > { %3594 = vmatprep.subr.bf16.mxu0 %v3593_v22 }
 0x1fd   : > { %3343 = vmatmul.mubr.msk.f32.vlgmr.msra.gmra.mrb[28].mxu0 %vm1652_vm7, %v1201_v44 }
 0x1fe   : > { %3596 = vmatpush3.bf16.msra.mxu0 %v3593_v22  ;;  %v547_v22 = vld [vmem:[%s5014_s4 + $0x48] sm:$0xff] }
 0x20a   : > { %v1354_v0 = vpop.f32.mrb[22].mxu0 }
 0x20b   : > { %v1355_v1 = vadd.f32 %v1354_v0, %v1207_v42  ;;  %v3317_v2 = vpop.f32.mrb[23].mxu0 }
 0x20c   : > { %v539_v2 = vld [vmem:[%s5014_s4 + $0x8] sm:$0xff] }
 0x20d   : > { %v1358_v4 = vadd.f32 3.0, %v1355_v1 }
 0x20f   : > { %v1359_v38 = vmax.f32 %v1358_v4, 0.0  ;;  %v543_v4 = vld [vmem:[%s5014_s4 + $0x28] sm:$0xff] }
 0x211   : > { %v1360_v5 = vmin.f32 %v1359_v38, 6.0 }
 0x213   : > { %v1361_v36 = vmul.f32 0.16666667, %v1360_v5 }
 0x215   : > { %v1362_v7 = vmul.f32 %v1361_v36, %v1355_v1 }
 0x217   : > { %3326 = vmatprep.subr.mxu1 %v1362_v7 }
 0x218   : > { %3327 = vmatpush3.msra.mxu1 %v1362_v7  ;;  %v3615_v7 = vpack.c.bf16 %v4453_v52, %v4425_v40  ;;  %v538_v40 = vld [vmem:[%s5014_s4] sm:$0xff] }
 0x219   : > { %3329 = vmatmul.mubr.msk.f32.vlgmr.msra.gmra.mrb[20].mxu1 %vm1383_vm3, %v3022_v12  ;;  %3584 = vmatprep.subr.bf16.mxu1 %v3573_v58  ;;  %v542_v52 = vld [vmem:[%s5014_s4 + $0x20] sm:$0xff] }
 0x21a   : > { %3586 = vmatpush3.bf16.msra.mxu1 %v3573_v58  ;;  %3331 = vmatprep.mubr.msk.f32.mxu1 %vm1383_vm3, %v3023_v14  ;;  %v4686_v14 = vpack.c.bf16 %v543_v4, %v539_v2 }
 0x21b   : > { %3589 = vmatprep.subr.msk.bf16.mxu1 %vm4595_vm6, %v3577_v32 }
 0x21d   : > { %3332 = vmatmul.mubr.msk.f32.gmra.mrb[22].mxu1 %vm1383_vm3, %v3024_v18 }
 0x21e   : > { %3592 = vmatpush3.bf16.msk.msra.mxu1 %vm4595_vm6, %v3577_v32  ;;  %3353 = vmatprep.mubr.msk.f32.mxu1 %vm1652_vm7, %v4543_v54  ;;  %v3031_v54 = vld [vmem:[%s5020_s10 + $0x30] sm:$0xff] }
 0x21f   : > { %3604 = vmatprep.subr.bf16.mxu1 %v3603_v28 }
 0x221   : > { %3354 = vmatmul.mubr.msk.f32.vlgmr.msra.gmra.mrb[24].mxu1 %vm1652_vm7, %v4545_v37  ;;  %v3032_v37 = vld [vmem:[%s5020_s10 + $0x38] sm:$0x1] }
 0x222   : > { %3356 = vmatprep.mubr.msk.f32.mxu1 %vm1652_vm7, %v4549_v16  ;;  %v3597_v16 = vpack.c.bf16 %v3032_v37, %v3031_v54  ;;  %3606 = vmatpush3.bf16.msra.mxu1 %v3603_v28  ;;  %v551_v54 = vld [vmem:[%s5014_s4 + $0x68] sm:$0x1] }
 0x224   : > { %3599 = vmatprep.subr.msk.bf16.mxu0 %vm4595_vm6, %v3597_v16 }
 0x225   : > { %3357 = vmatmul.mubr.msk.f32.gmra.mrb[26].mxu1 %vm1652_vm7, %v4552_v20  ;;  %3602 = vmatpush3.bf16.msk.msra.mxu0 %vm4595_vm6, %v3597_v16  ;;  %v3613_v20 = vpack.c.bf16 %v4447_v50, %v4417_v34  ;;  %v3036_v34 = vld [vmem:[%s5020_s10 + $0x58] sm:$0x1]  ;;  %v4704_v16 = vpack.c.bf16 %v542_v52, %v538_v40 }
 0x226   : > { %v3607_v50 = vpack.c.bf16 %v3036_v34, %v3035_v29  ;;  %v1508_v34 = vpop.permute.xlu1 %1507 }
 0x227   : > { %3614 = vmatprep.subr.bf16.mxu0 %v3613_v20  ;;  %v4706_v20 = vpack.c.bf16 %v551_v54, %v547_v22  ;;  %v3619_v54 = vpack.c.bf16 %v4516_v15, %v4503_v9  ;;  %v540_v15 = vld [vmem:[%s5014_s4 + $0x10] sm:$0xff] }
 0x228   : > { %3609 = vmatprep.subr.msk.bf16.mxu1 %vm4595_vm6, %v3607_v50 }
 0x229   : > { %3612 = vmatpush3.bf16.msk.msra.mxu1 %vm4595_vm6, %v3607_v50  ;;  %v4722_v50 = vpack.c.bf16 %v550_v27, %v546_v26 }
 0x22a   : > { %3618 = vmatprep.subr.bf16.mxu1 %v3617_v31  ;;  %v1513_v31 = vpop.permute.xlu0 %1512 }
 0x2c8   : > { %v3322_v35 = vpop.f32.mrb[24].mxu0 }
 0x2c9   : > { %v1462_v39 = vpop.f32.mrb[25].mxu0  ;;  %v1468_v41 = vadd.f32 %v3322_v35, %v1371_v33 }
 0x2ca   : > { %v1463_v43 = vadd.f32 %v1462_v39, %v1366_v3 }
 0x2cb   : > { %v1482_v44 = vsub.f32 0.0, %v1468_v41 }
 0x2cc   : > { %v1481_v48 = vsub.f32 0.0, %v1463_v43  ;;  %v3325_v61 = vpop.f32.mrb[26].mxu0 }
 0x2cd   : > { %v1478_v55 = vadd.f32 %v3325_v61, %v1381_v47  ;;  %v1487_v49 = vmul.f32 1.442695, %v1482_v44  ;;  %v1472_v42 = vpop.f32.mrb[27].mxu0  ;;  %v1518_v44 = vpop.permute.xlu1 %1517 }
 0x2ce   : > { %v1485_v53 = vmul.f32 1.442695, %v1481_v48  ;;  %v1473_v13 = vadd.f32 %v1472_v42, %v1376_v45  ;;  %v1523_v45 = vpop.permute.xlu0 %1522 }
 0x2cf   : > { %3696 = vpow2.f32 %v1487_v49  ;;  %v1484_v63 = vsub.f32 0.0, %v1478_v55 }
 0x2d0   : > { %3698 = vpow2.f32 %v1485_v53  ;;  %v3344_v8 = vpop.f32.mrb[28].mxu0  ;;  %v1483_v10 = vsub.f32 0.0, %v1473_v13 }
 0x2d1   : > { %v1735_v51 = vadd.f32 %v3344_v8, %v4674_v30  ;;  %v1729_v6 = vpop.f32.mrb[29].mxu0  ;;  %v1491_v24 = vmul.f32 1.442695, %v1484_v63 }
 0x2d2   : > { %v1489_v56 = vmul.f32 1.442695, %v1483_v10  ;;  %v1730_v11 = vadd.f32 %v4674_v30, %v1729_v6 }
 0x2d3   : > { %v1739_v46 = vadd.f32 3.0, %v1735_v51 }
 0x2d4   : > { %3700 = vpow2.f32 %v1489_v56  ;;  %v1738_v57 = vadd.f32 3.0, %v1730_v11 }
 0x2d5   : > { %v1741_v23 = vmax.f32 %v1739_v46, 0.0  ;;  %3702 = vpow2.f32 %v1491_v24 }
 0x2d6   : > { %v1740_v58 = vmax.f32 %v1738_v57, 0.0 }
 0x2d7   : > { %v1743_v59 = vmin.f32 %v1741_v23, 6.0 }
 0x2d8   : > { %v1742_v25 = vmin.f32 %v1740_v58, 6.0 }
 0x2d9   : > { %v3697_v32 = vpop.eup %3696  ;;  %v1745_v62 = vmul.f32 0.16666667, %v1743_v59 }
 0x2da   : > { %v3699_v0 = vpop.eup %3698  ;;  %v1744_v1 = vmul.f32 0.16666667, %v1742_v25  ;;  %v1494_v5 = vadd.f32 1.0, %v3697_v32 }
 0x2db   : > { %v1493_v38 = vadd.f32 1.0, %v3699_v0  ;;  %v1747_v12 = vmul.f32 %v1745_v62, %v1735_v51 }
 0x2dc   : > { %v1746_v36 = vmul.f32 %v1744_v1, %v1730_v11 }
 0x2dd   : > { %3704 = vrcp.f32 %v1493_v38 }
 0x2de   : > { %v3701_v18 = vpop.eup %3700  ;;  %3367 = vmatprep.mubr.msk.f32.mxu0 %vm1652_vm7, %v1746_v36  ;;  %3706 = vrcp.f32 %v1494_v5 }
 0x2df   : > { %v1495_v19 = vadd.f32 1.0, %v3701_v18  ;;  %3368 = vmatmul.mubr.msk.f32.vlgmr.msra.gmra.mrb[30].mxu0 %vm1652_vm7, %v1747_v12  ;;  %v3703_v21 = vpop.eup %3702  ;;  %v545_v12 = vld [vmem:[%s5014_s4 + $0x38] sm:$0xff] }
 0x2e0   : > { %3616 = vmatpush1.bf16.msra.mxu0 %v3615_v7  ;;  %2173 = vmatprep.mubr.f32.mxu0 %v3770_v17  ;;  %v1496_v37 = vadd.f32 1.0, %v3703_v21  ;;  %v541_v7 = vld [vmem:[%s5014_s4 + $0x18] sm:$0xff] }
 0x2e1   : > { %3622 = vmatprep.subr.bf16.mxu0 %v4686_v14  ;;  %3708 = vrcp.f32 %v1495_v19 }
 0x2e2   : > { %3710 = vrcp.f32 %v1496_v37  ;;  %v4756_v37 = vpack.c.bf16 %v545_v12, %v541_v7 }
 0x2e7   : > { %v4714_v28 = vpop.eup %3704 }
 0x2e8   : > { %3078 = vmatmul.mubr.msk.f32.vlgmr.msra.gmra.mrb[32].mxu0 %vm643_vm0, %v4714_v28  ;;  %v4718_v29 = vpop.eup %3706 }
 0x2e9   : > { %2179 = vmatprep.mubr.f32.mxu0 %v3770_v17  ;;  %3624 = vmatpush1.bf16.msra.mxu0 %v4704_v16 }
 0x2ea   : > { %3627 = vmatprep.subr.msk.bf16.mxu0 %vm4595_vm6, %v4706_v20 }
 0x2eb   : > { %v4729_v3 = vpop.eup %3708 }
 0x2ec   : > { %v3330_v33 = vpop.f32.mrb[20].mxu1  ;;  %3079 = vmatmul.mubr.msk.f32.gmra.mrb[34].mxu0 %vm643_vm0, %v4718_v29  ;;  %v4739_v13 = vpop.eup %3710 }
 0x2ed   : > { %v1609_v35 = vadd.f32 %v3330_v33, %v1513_v31  ;;  %v1603_v39 = vpop.f32.mrb[21].mxu1  ;;  %2185 = vmatprep.mubr.f32.mxu0 %v3770_v17  ;;  %3630 = vmatpush1.bf16.msk.msra.mxu0 %vm4595_vm6, %v4722_v50 }
 0x2ee   : > { %v1604_v41 = vadd.f32 %v1603_v39, %v1508_v34  ;;  %3642 = vmatprep.subr.bf16.mxu0 %v4686_v14 }
 0x2ef   : > { %v1623_v43 = vsub.f32 0.0, %v1609_v35 }
 0x2f0   : > { %v1622_v47 = vsub.f32 0.0, %v1604_v41  ;;  %v3333_v48 = vpop.f32.mrb[22].mxu1  ;;  %3080 = vmatmul.mubr.msk.f32.gmra.mrb[36].mxu0 %vm643_vm0, %v4729_v3 }
 0x2f1   : > { %v1628_v61 = vmul.f32 1.442695, %v1623_v43  ;;  %v1619_v55 = vadd.f32 %v3333_v48, %v1523_v45  ;;  %v1613_v49 = vpop.f32.mrb[23].mxu1  ;;  %2191 = vmatprep.mubr.f32.mxu0 %v3770_v17  ;;  %v544_v43 = vld [vmem:[%s5014_s4 + $0x30] sm:$0xff]  ;;  %v553_v45 = vld [vmem:[%s5014_s4 + $0x78] sm:$0x1] }
 0x2f2   : > { %v1626_v42 = vmul.f32 1.442695, %v1622_v47  ;;  %v1614_v53 = vadd.f32 %v1613_v49, %v1518_v44  ;;  %v549_v44 = vld [vmem:[%s5014_s4 + $0x58] sm:$0xff]  ;;  %v4776_v48 = vpack.c.bf16 %v544_v43, %v540_v15  ;;  %v552_v49 = vld [vmem:[%s5014_s4 + $0x70] sm:$0x1] }
 0x2f3   : > { %3712 = vpow2.f32 %v1628_v61  ;;  %v1625_v63 = vsub.f32 0.0, %v1619_v55  ;;  %v4778_v61 = vpack.c.bf16 %v553_v45, %v549_v44  ;;  %v548_v55 = vld [vmem:[%s5014_s4 + $0x50] sm:$0xff] }
 0x2f4   : > { %3714 = vpow2.f32 %v1626_v42  ;;  %v3355_v8 = vpop.f32.mrb[24].mxu1  ;;  %3081 = vmatmul.mubr.msk.f32.gmra.mrb[38].mxu0 %vm643_vm0, %v4739_v13  ;;  %v1624_v10 = vsub.f32 0.0, %v1614_v53  ;;  %v4792_v53 = vpack.c.bf16 %v552_v49, %v548_v55 }
 0x2f5   : > { %v1832_v51 = vadd.f32 %v3355_v8, %v4674_v30  ;;  %v1826_v6 = vpop.f32.mrb[25].mxu1  ;;  %2375 = vmatprep.mubr.f32.mxu0 %v3770_v17  ;;  %v1632_v24 = vmul.f32 1.442695, %v1625_v63 }
 0x2f6   : > { %v1630_v56 = vmul.f32 1.442695, %v1624_v10  ;;  %v1827_v11 = vadd.f32 %v4674_v30, %v1826_v6 }
 0x2f7   : > { %v1846_v46 = vadd.f32 3.0, %v1832_v51 }
 0x2f8   : > { %3716 = vpow2.f32 %v1630_v56  ;;  %v1845_v57 = vadd.f32 3.0, %v1827_v11  ;;  %v3358_v23 = vpop.f32.mrb[26].mxu1 }
 0x2f9   : > { %v1850_v58 = vmax.f32 %v1846_v46, 0.0  ;;  %v1842_v59 = vadd.f32 %v3358_v23, %v4674_v30  ;;  %v1836_v25 = vpop.f32.mrb[27].mxu1  ;;  %3718 = vpow2.f32 %v1632_v24 }
 0x2fa   : > { %v1849_v32 = vmax.f32 %v1845_v57, 0.0  ;;  %v1837_v62 = vadd.f32 %v4674_v30, %v1836_v25 }
 0x2fb   : > { %v1854_v0 = vmin.f32 %v1850_v58, 6.0  ;;  %v1848_v1 = vadd.f32 3.0, %v1842_v59 }
 0x2fc   : > { %v1853_v2 = vmin.f32 %v1849_v32, 6.0  ;;  %v1847_v4 = vadd.f32 3.0, %v1837_v62 }
 0x2fd   : > { %v3713_v38 = vpop.eup %3712  ;;  %v1858_v5 = vmul.f32 0.16666667, %v1854_v0  ;;  %v1852_v36 = vmax.f32 %v1848_v1, 0.0 }
 0x2fe   : > { %v3715_v18 = vpop.eup %3714  ;;  %v1857_v19 = vmul.f32 0.16666667, %v1853_v2  ;;  %v1851_v21 = vmax.f32 %v1847_v4, 0.0  ;;  %v1635_v26 = vadd.f32 1.0, %v3713_v38  ;;  %v3072_v38 = vld [vmem:[%s5021_s11 + $0x2] ss:$0 sm:$0xff] }
 0x2ff   : > { %v1634_v30 = vadd.f32 1.0, %v3715_v18  ;;  %v1856_v40 = vmin.f32 %v1852_v36, 6.0  ;;  %v1862_v27 = vmul.f32 %v1858_v5, %v1832_v51 }
 0x300   : > { %v1861_v52 = vmul.f32 %v1857_v19, %v1827_v11  ;;  %v1855_v22 = vmin.f32 %v1851_v21, 6.0 }
 0x301   : > { %3720 = vrcp.f32 %v1634_v30  ;;  %v1860_v34 = vmul.f32 0.16666667, %v1856_v40 }
 0x302   : > { %v3717_v31 = vpop.eup %3716  ;;  %v1859_v33 = vmul.f32 0.16666667, %v1855_v22  ;;  %3378 = vmatprep.mubr.msk.f32.mxu1 %vm1652_vm7, %v1861_v52  ;;  %3722 = vrcp.f32 %v1635_v26 }
 0x303   : > { %3379 = vmatmul.mubr.msk.f32.vlgmr.msra.gmra.mrb[28].mxu1 %vm1652_vm7, %v1862_v27  ;;  %v1636_v39 = vadd.f32 1.0, %v3717_v31  ;;  %v1864_v41 = vmul.f32 %v1860_v34, %v1842_v59  ;;  %v3719_v9 = vpop.eup %3718 }
 0x304   : > { %v1863_v35 = vmul.f32 %v1859_v33, %v1837_v62  ;;  %3620 = vmatpush1.bf16.msra.mxu1 %v3619_v54  ;;  %v1637_v47 = vadd.f32 1.0, %v3719_v9 }
 0x305   : > { %3632 = vmatprep.subr.bf16.mxu1 %v4756_v37  ;;  %3724 = vrcp.f32 %v1636_v39 }
 0x306   : > { %3381 = vmatprep.mubr.msk.f32.mxu1 %vm1652_vm7, %v1863_v35  ;;  %3726 = vrcp.f32 %v1637_v47 }
 0x307   : > { %3382 = vmatmul.mubr.msk.f32.gmra.mrb[30].mxu1 %vm1652_vm7, %v1864_v41 }
 0x308   : > { %2262 = vmatprep.mubr.f32.mxu1 %v3770_v17 }
 0x30b   : > { %v3721_v42 = vpop.eup %3720  ;;  %3082 = vmatmul.mubr.msk.f32.vlgmr.msra.gmra.mrb[32].mxu1 %vm643_vm0, %v4714_v28 }
 0x30c   : > { %3088 = vmatmul.mubr.msk.f32.vlgmr.msra.gmra.mrb[40].mxu0 %vm1652_vm7, %v3721_v42  ;;  %2268 = vmatprep.mubr.f32.mxu1 %v3770_v17  ;;  %v3723_v63 = vpop.eup %3722 }
 0x30d   : > { %2381 = vmatprep.mubr.f32.mxu0 %v3770_v17  ;;  %3634 = vmatpush1.bf16.msra.mxu1 %v4776_v48 }
 0x30e   : > { %3637 = vmatprep.subr.msk.bf16.mxu1 %vm4595_vm6, %v4778_v61  ;;  %3644 = vmatpush1.bf16.msra.mxu0 %v4704_v16 }
 0x30f   : > { %3083 = vmatmul.mubr.msk.f32.gmra.mrb[34].mxu1 %vm643_vm0, %v4718_v29  ;;  %3647 = vmatprep.subr.msk.bf16.mxu0 %vm4595_vm6, %v4706_v20  ;;  %v3725_v28 = vpop.eup %3724 }
 0x310   : > { %3089 = vmatmul.mubr.msk.f32.gmra.mrb[42].mxu0 %vm1652_vm7, %v3723_v63  ;;  %2274 = vmatprep.mubr.f32.mxu1 %v3770_v17  ;;  %v3727_v29 = vpop.eup %3726 }
 0x311   : > { %2387 = vmatprep.mubr.f32.mxu0 %v3770_v17  ;;  %3640 = vmatpush1.bf16.msk.msra.mxu1 %vm4595_vm6, %v4792_v53 }
 0x312   : > { %3652 = vmatprep.subr.bf16.mxu1 %v4756_v37  ;;  %3650 = vmatpush1.bf16.msk.msra.mxu0 %vm4595_vm6, %v4722_v50 }
 0x313   : > { %3084 = vmatmul.mubr.msk.f32.gmra.mrb[36].mxu1 %vm643_vm0, %v4729_v3  ;;  %3662 = vmatprep.subr.bf16.mxu0 %v4686_v14  ;;  %v3068_v14 = vld [vmem:[%s5021_s11 + $0x1] ss:$0 sm:$0xff] }
 0x314   : > { %3090 = vmatmul.mubr.msk.f32.gmra.mrb[44].mxu0 %vm1652_vm7, %v3725_v28  ;;  %2280 = vmatprep.mubr.f32.mxu1 %v3770_v17 }
 0x315   : > { %2393 = vmatprep.mubr.f32.mxu0 %v3770_v17 }
 0x317   : > { %3085 = vmatmul.mubr.msk.f32.gmra.mrb[38].mxu1 %vm643_vm0, %v4739_v13 }
 0x318   : > { %3091 = vmatmul.mubr.msk.f32.gmra.mrb[46].mxu0 %vm1652_vm7, %v3727_v29  ;;  %2464 = vmatprep.mubr.f32.mxu1 %v3770_v17 }
 0x319   : > { %2575 = vmatprep.mubr.f32.mxu0 %v3770_v17 }
 0x31b   : > { %3094 = vmatmul.mubr.msk.f32.vlgmr.msra.gmra.mrb[40].mxu1 %vm1652_vm7, %v3721_v42 }
 0x31c   : > { %2470 = vmatprep.mubr.f32.mxu1 %v3770_v17  ;;  %3654 = vmatpush1.bf16.msra.mxu1 %v4776_v48 }
 0x31d   : > { %3657 = vmatprep.subr.msk.bf16.mxu1 %vm4595_vm6, %v4778_v61 }
 0x31f   : > { %3095 = vmatmul.mubr.msk.f32.gmra.mrb[42].mxu1 %vm1652_vm7, %v3723_v63 }
 0x320   : > { %2476 = vmatprep.mubr.f32.mxu1 %v3770_v17  ;;  %3660 = vmatpush1.bf16.msk.msra.mxu1 %vm4595_vm6, %v4792_v53 }
 0x321   : > { %3672 = vmatprep.subr.bf16.mxu1 %v4756_v37 }
 0x323   : > { %3096 = vmatmul.mubr.msk.f32.gmra.mrb[44].mxu1 %vm1652_vm7, %v3725_v28 }
 0x324   : > { %2482 = vmatprep.mubr.f32.mxu1 %v3770_v17 }
 0x327   : > { %3097 = vmatmul.mubr.msk.f32.gmra.mrb[46].mxu1 %vm1652_vm7, %v3727_v29 }
 0x328   : > { %2652 = vmatprep.mubr.f32.mxu1 %v3770_v17 }
 0x3b2   : > { %v3369_v3 = vpop.f32.mrb[30].mxu0 }
 0x3b3   : > { %v1952_v13 = vadd.f32 %v3369_v3, %v3068_v14  ;;  %v1946_v8 = vpop.f32.mrb[31].mxu0 }
 0x3b4   : > { %v1947_v10 = vadd.f32 %v3068_v14, %v1946_v8 }
 0x3b5   : > { %v1956_v51 = vsub.f32 0.0, %v1952_v13 }
 0x3b6   : > { %v1955_v6 = vsub.f32 0.0, %v1947_v10 }
 0x3b7   : > { %v1959_v56 = vmul.f32 1.442695, %v1956_v51 }
 0x3b8   : > { %v1957_v11 = vmul.f32 1.442695, %v1955_v6 }
 0x3b9   : > { %3728 = vpow2.f32 %v1959_v56 }
 0x3ba   : > { %3730 = vpow2.f32 %v1957_v11 }
 0x3bb   : > { %v2175_v46 = vpop.f32.mrb[32].mxu0 }
 0x3bc   : > { %v2177_v24 = vpop.f32.mrb[33].mxu0 }
 0x3bf   : > { %v2181_v57 = vpop.f32.mrb[34].mxu0 }
 0x3c0   : > { %v2183_v23 = vpop.f32.mrb[35].mxu0 }
 0x3c3   : > { %v3729_v58 = vpop.eup %3728  ;;  %v4843_v59 = vpop.f32.mrb[36].mxu0 }
 0x3c4   : > { %v3731_v25 = vpop.eup %3730  ;;  %v4845_v32 = vpop.f32.mrb[37].mxu0  ;;  %v1962_v0 = vadd.f32 1.0, %v3729_v58 }
 0x3c5   : > { %v1961_v62 = vadd.f32 1.0, %v3731_v25 }
 0x3c7   : > { %3732 = vrcp.f32 %v1961_v62  ;;  %v4847_v1 = vpop.f32.mrb[38].mxu0 }
 0x3c8   : > { %v4849_v2 = vpop.f32.mrb[39].mxu0  ;;  %3734 = vrcp.f32 %v1962_v0 }
 0x3d1   : > { %v3733_v4 = vpop.eup %3732 }
 0x3d2   : > { %3100 = vmatmul.mubr.msk.f32.vlgmr.msra.gmra.mrb[48].mxu0 %vm1652_vm7, %v3733_v4  ;;  %3104 = vmatmul.mubr.msk.f32.vlgmr.msra.gmra.mrb[48].mxu1 %vm1652_vm7, %v3733_v4  ;;  %v3735_v5 = vpop.eup %3734 }
 0x3d3   : > { %2581 = vmatprep.mubr.f32.mxu0 %v3770_v17  ;;  %2658 = vmatprep.mubr.f32.mxu1 %v3770_v17 }
 0x3d4   : > { %3664 = vmatpush1.bf16.msra.mxu0 %v4704_v16  ;;  %3674 = vmatpush1.bf16.msra.mxu1 %v4776_v48 }
 0x3d5   : > { %3667 = vmatprep.subr.msk.bf16.mxu0 %vm4595_vm6, %v4706_v20  ;;  %3677 = vmatprep.subr.msk.bf16.mxu1 %vm4595_vm6, %v4778_v61 }
 0x3d6   : > { %v3380_v36 = vpop.f32.mrb[28].mxu1  ;;  %3101 = vmatmul.mubr.msk.f32.gmra.mrb[50].mxu0 %vm1652_vm7, %v3735_v5  ;;  %3105 = vmatmul.mubr.msk.f32.gmra.mrb[50].mxu1 %vm1652_vm7, %v3735_v5 }
 0x3d7   : > { %v2060_v7 = vadd.f32 %v3380_v36, %v3072_v38  ;;  %v2054_v12 = vpop.f32.mrb[29].mxu1  ;;  %2779 = vmatprep.mubr.f32.mxu0 %v3770_v17  ;;  %2868 = vmatprep.mubr.f32.mxu1 %v3770_v17 }
 0x3d8   : > { %v2055_v16 = vadd.f32 %v3072_v38, %v2054_v12  ;;  %3670 = vmatpush1.bf16.msk.msra.mxu0 %vm4595_vm6, %v4722_v50  ;;  %3680 = vmatpush1.bf16.msk.msra.mxu1 %vm4595_vm6, %v4792_v53 }
 0x3d9   : > { %v2074_v20 = vsub.f32 0.0, %v2060_v7 }
 0x3da   : > { %v2073_v18 = vsub.f32 0.0, %v2055_v16  ;;  %v3383_v19 = vpop.f32.mrb[30].mxu1 }
 0x3db   : > { %v2079_v21 = vmul.f32 1.442695, %v2074_v20  ;;  %v2070_v30 = vadd.f32 %v3383_v19, %v3072_v38  ;;  %v2064_v40 = vpop.f32.mrb[31].mxu1 }
 0x3dc   : > { %v2077_v52 = vmul.f32 1.442695, %v2073_v18  ;;  %v2065_v22 = vadd.f32 %v3072_v38, %v2064_v40  ;;  %v3752_v40 = vld [vmem:[%s5013_s3 + $0x18] sm:$0xff] }
 0x3dd   : > { %3736 = vpow2.f32 %v2079_v21  ;;  %v2076_v54 = vsub.f32 0.0, %v2070_v30 }
 0x3de   : > { %3738 = vpow2.f32 %v2077_v52  ;;  %v2075_v37 = vsub.f32 0.0, %v2065_v22  ;;  %v2264_v26 = vpop.f32.mrb[32].mxu1 }
 0x3df   : > { %v2266_v27 = vpop.f32.mrb[33].mxu1  ;;  %v2377_v34 = vpop.f32.mrb[40].mxu0  ;;  %v2083_v35 = vmul.f32 1.442695, %v2076_v54 }
 0x3e0   : > { %v2081_v50 = vmul.f32 1.442695, %v2075_v37  ;;  %v4876_v31 = vmul.f32 %v2377_v34, %v2175_v46  ;;  %v2379_v60 = vpop.f32.mrb[41].mxu0  ;;  %v3755_v34 = vld [vmem:[%s5013_s3 + $0x20] sm:$0xff] }
 0x3e1   : > { %v4878_v33 = vmul.f32 %v2379_v60, %v2177_v24  ;;  %v3756_v60 = vld [vmem:[%s5013_s3 + $0x30] sm:$0xff] }
 0x3e2   : > { %3740 = vpow2.f32 %v2081_v50  ;;  %v2270_v39 = vpop.f32.mrb[34].mxu1 }
 0x3e3   : > { %v2272_v41 = vpop.f32.mrb[35].mxu1  ;;  %v2383_v9 = vpop.f32.mrb[42].mxu0  ;;  %3742 = vpow2.f32 %v2083_v35 }
 0x3e4   : > { %v4880_v15 = vmul.f32 %v2383_v9, %v2181_v57  ;;  %v2385_v43 = vpop.f32.mrb[43].mxu0  ;;  %v3757_v9 = vld [vmem:[%s5013_s3 + $0x8] sm:$0xff] }
 0x3e5   : > { %v4882_v44 = vmul.f32 %v2385_v43, %v2183_v23 }
 0x3e6   : > { %v2276_v45 = vpop.f32.mrb[36].mxu1 }
 0x3e7   : > { %v3737_v47 = vpop.eup %3736  ;;  %v2278_v48 = vpop.f32.mrb[37].mxu1 }
 0x3e8   : > { %v2389_v61 = vpop.f32.mrb[44].mxu0  ;;  %v3739_v55 = vpop.eup %3738  ;;  %v2086_v29 = vadd.f32 1.0, %v3737_v47 }
 0x3e9   : > { %v4885_v49 = vmul.f32 %v2389_v61, %v4843_v59  ;;  %v2391_v42 = vpop.f32.mrb[45].mxu0  ;;  %v2085_v53 = vadd.f32 1.0, %v3739_v55 }
 0x3ea   : > { %v4888_v63 = vmul.f32 %v2391_v42, %v4845_v32  ;;  %v2282_v28 = vpop.f32.mrb[38].mxu1 }
 0x3eb   : > { %3744 = vrcp.f32 %v2085_v53  ;;  %v2284_v14 = vpop.f32.mrb[39].mxu1  ;;  %v2395_v3 = vpop.f32.mrb[46].mxu0 }
 0x3ec   : > { %v3741_v13 = vpop.eup %3740  ;;  %v4891_v8 = vmul.f32 %v2395_v3, %v4847_v1  ;;  %v2397_v10 = vpop.f32.mrb[47].mxu0  ;;  %3746 = vrcp.f32 %v2086_v29 }
 0x3ed   : > { %v4894_v51 = vmul.f32 %v2397_v10, %v4849_v2  ;;  %v2087_v56 = vadd.f32 1.0, %v3741_v13  ;;  %v3743_v24 = vpop.eup %3742 }
 0x3ee   : > { %v2466_v6 = vpop.f32.mrb[40].mxu1  ;;  %v2088_v58 = vadd.f32 1.0, %v3743_v24 }
 0x3ef   : > { %v4896_v11 = vmul.f32 %v2466_v6, %v2264_v26  ;;  %v2468_v46 = vpop.f32.mrb[41].mxu1  ;;  %3748 = vrcp.f32 %v2087_v56  ;;  %v3754_v26 = vld [vmem:[%s5013_s3 + $0x10] sm:$0xff] }
 0x3f0   : > { %v4898_v57 = vmul.f32 %v2468_v46, %v2266_v27  ;;  %3750 = vrcp.f32 %v2088_v58 }
 0x3f2   : > { %v2472_v23 = vpop.f32.mrb[42].mxu1 }
 0x3f3   : > { %v4900_v59 = vmul.f32 %v2472_v23, %v2270_v39  ;;  %v2474_v25 = vpop.f32.mrb[43].mxu1 }
 0x3f4   : > { %v4902_v32 = vmul.f32 %v2474_v25, %v2272_v41 }
 0x3f5   : > { %v3745_v62 = vpop.eup %3744 }
 0x3f6   : > { %v2478_v0 = vpop.f32.mrb[44].mxu1  ;;  %3108 = vmatmul.mubr.msk.f32.vlgmr.msra.gmra.mrb[52].mxu0 %vm1652_vm7, %v3745_v62  ;;  %3114 = vmatmul.mubr.msk.f32.vlgmr.msra.gmra.mrb[52].mxu1 %vm1652_vm7, %v3745_v62  ;;  %v3747_v38 = vpop.eup %3746 }
 0x3f7   : > { %v4906_v1 = vmul.f32 %v2478_v0, %v2276_v45  ;;  %v2480_v2 = vpop.f32.mrb[45].mxu1  ;;  %2785 = vmatprep.mubr.f32.mxu0 %v3770_v17  ;;  %2874 = vmatprep.mubr.f32.mxu1 %v3770_v17  ;;  %v3758_v45 = vld [vmem:[%s5013_s3 + $0x28] sm:$0xff] }
 0x3f8   : > { %v4910_v4 = vmul.f32 %v2480_v2, %v2278_v48  ;;  %v3759_v48 = vld [vmem:[%s5013_s3 + $0x38] sm:$0xff] }
 0x3f9   : > { %v3749_v16 = vpop.eup %3748 }
 0x3fa   : > { %v2484_v5 = vpop.f32.mrb[46].mxu1  ;;  %3109 = vmatmul.mubr.msk.f32.gmra.mrb[54].mxu0 %vm1652_vm7, %v3747_v38  ;;  %3115 = vmatmul.mubr.msk.f32.gmra.mrb[54].mxu1 %vm1652_vm7, %v3747_v38  ;;  %v3751_v20 = vpop.eup %3750 }
 0x3fb   : > { %v4914_v36 = vmul.f32 %v2484_v5, %v2282_v28  ;;  %v2486_v7 = vpop.f32.mrb[47].mxu1  ;;  %2791 = vmatprep.mubr.f32.mxu0 %v3770_v17  ;;  %2880 = vmatprep.mubr.f32.mxu1 %v3770_v17 }
 0x3fc   : > { %v4918_v12 = vmul.f32 %v2486_v7, %v2284_v14 }
 0x3fe   : > { %3110 = vmatmul.mubr.msk.f32.gmra.mrb[56].mxu0 %vm1652_vm7, %v3749_v16  ;;  %3116 = vmatmul.mubr.msk.f32.gmra.mrb[56].mxu1 %vm1652_vm7, %v3749_v16 }
 0x3ff   : > { %2797 = vmatprep.mubr.f32.mxu0 %v3770_v17  ;;  %2886 = vmatprep.mubr.f32.mxu1 %v3770_v17  ;;  %v3753_v17 = vld [vmem:[%s5013_s3] sm:$0xff] }
 0x402   : > { %3111 = vmatmul.mubr.msk.f32.gmra.mrb[58].mxu0 %vm1652_vm7, %v3751_v20  ;;  %3117 = vmatmul.mubr.msk.f32.gmra.mrb[58].mxu1 %vm1652_vm7, %v3751_v20 }
 0x4a5   : > { %v2577_v18 = vpop.f32.mrb[48].mxu0  ;;  %v2654_v19 = vpop.f32.mrb[48].mxu1 }
 0x4a6   : > { %v2579_v21 = vpop.f32.mrb[49].mxu0  ;;  %v2656_v30 = vpop.f32.mrb[49].mxu1  ;;  %v2665_v37 = vmul.f32 %v3753_v17, %v2577_v18  ;;  %v2667_v27 = vmul.f32 %v3754_v26, %v2654_v19 }
 0x4a7   : > { %v2668_v52 = vmul.f32 %v3752_v40, %v2656_v30  ;;  %v2666_v43 = vmul.f32 %v3757_v9, %v2579_v21 }
 0x4a9   : > { %v2583_v22 = vpop.f32.mrb[50].mxu0  ;;  %v2660_v54 = vpop.f32.mrb[50].mxu1  ;;  %v2694_v53 = vsel %vm643_vm0, %v2668_v52, 0.0 }
 0x4aa   : > { %v2669_v50 = vmul.f32 %v3755_v34, %v2583_v22  ;;  %v2671_v35 = vmul.f32 %v3756_v60, %v2660_v54  ;;  %v2585_v39 = vpop.f32.mrb[51].mxu0  ;;  %v2662_v41 = vpop.f32.mrb[51].mxu1 }
 0x4ab   : > { %v2670_v47 = vmul.f32 %v3758_v45, %v2585_v39  ;;  %v2672_v61 = vmul.f32 %v3759_v48, %v2662_v41 }
 0x4ac   : > { %v2673_v55 = vadd.f32 %v2669_v50, %v2665_v37  ;;  %v2687_v42 = vadd.f32 %v2671_v35, %v2667_v27 }
 0x4ad   : > { %v2680_v28 = vadd.f32 %v2670_v47, %v2666_v43  ;;  %v2695_v29 = vsel %vm643_vm0, %v2672_v61, 0.0 }
 0x4ae   : > { %v2696_v14 = vadd.f32 %v2695_v29, %v2694_v53  ;;  %v2674_v3 = vrot.slane %v2673_v55, 4  ;;  %v2688_v13 = vrot.slane %v2687_v42, 4 }
 0x4af   : > { %v2681_v10 = vrot.slane %v2680_v28, 4 }
 0x4b0   : > { %v2697_v6 = vrot.slane %v2696_v14, 4  ;;  %v2675_v56 = vadd.f32 %v2674_v3, %v2673_v55  ;;  %v2689_v46 = vadd.f32 %v2688_v13, %v2687_v42 }
 0x4b1   : > { %v2682_v24 = vadd.f32 %v2681_v10, %v2680_v28 }
 0x4b2   : > { %v2698_v23 = vadd.f32 %v2697_v6, %v2696_v14  ;;  %v2676_v58 = vrot.slane %v2675_v56, 2  ;;  %v2690_v25 = vrot.slane %v2689_v46, 2 }
 0x4b3   : > { %v2683_v62 = vrot.slane %v2682_v24, 2 }
 0x4b4   : > { %v2699_v0 = vrot.slane %v2698_v23, 2  ;;  %v2677_v2 = vadd.f32 %v2676_v58, %v2675_v56  ;;  %v2691_v38 = vadd.f32 %v2690_v25, %v2689_v46 }
 0x4b5   : > { %v2684_v5 = vadd.f32 %v2683_v62, %v2682_v24 }
 0x4b6   : > { %v2700_v7 = vadd.f32 %v2699_v0, %v2698_v23  ;;  %v2678_v16 = vrot.slane %v2677_v2, 1  ;;  %v2692_v20 = vrot.slane %v2691_v38, 1 }
 0x4b7   : > { %v2685_v18 = vrot.slane %v2684_v5, 1 }
 0x4b8   : > { %v2701_v19 = vrot.slane %v2700_v7, 1  ;;  %v2679_v21 = vadd.f32 %v2678_v16, %v2677_v2  ;;  %v2693_v30 = vadd.f32 %v2692_v20, %v2691_v38 }
 0x4b9   : > { %v4952_v22 = vadd.f32 %v2685_v18, %v2684_v5 }
 0x4ba   : > { %v4954_v54 = vadd.f32 %v2701_v19, %v2700_v7 }
 0x4c9   : > { %v2781_v40 = vpop.f32.mrb[52].mxu0  ;;  %v2870_v52 = vpop.f32.mrb[52].mxu1 }
 0x4ca   : > { %v2893_v17 = vmul.f32 %v2781_v40, %v2679_v21  ;;  %v2895_v37 = vmul.f32 %v2870_v52, %v2693_v30  ;;  %v2783_v26 = vpop.f32.mrb[53].mxu0  ;;  %v2872_v27 = vpop.f32.mrb[53].mxu1 }
 0x4cb   : > { %v2894_v34 = vmul.f32 %v2783_v26, %v4952_v22  ;;  %v2896_v50 = vmul.f32 %v2872_v27, %v4954_v54 }
 0x4cc   : > { %v2909_v60 = vadd.f32 %v2893_v17, %v4876_v31  ;;  %v2911_v35 = vadd.f32 %v2895_v37, %v4896_v11 }
 0x4cd   : > { %v2910_v39 = vadd.f32 %v2894_v34, %v4878_v33  ;;  %v2912_v41 = vadd.f32 %v2896_v50, %v4898_v57  ;;  %v2787_v9 = vpop.f32.mrb[54].mxu0  ;;  %v2876_v43 = vpop.f32.mrb[54].mxu1 }
 0x4ce   : > { %v2925_v45 = vmul.f32 0.5, %v2909_v60  ;;  %v2927_v31 = vmul.f32 0.5, %v2911_v35  ;;  %v2897_v47 = vmul.f32 %v2787_v9, %v2679_v21  ;;  %v2899_v11 = vmul.f32 %v2876_v43, %v2693_v30  ;;  %v2789_v48 = vpop.f32.mrb[55].mxu0  ;;  %v2878_v61 = vpop.f32.mrb[55].mxu1 }
 0x4cf   : > { %v2926_v55 = vmul.f32 0.5, %v2910_v39  ;;  %v2928_v42 = vmul.f32 0.5, %v2912_v41  ;;  %v2898_v53 = vmul.f32 %v2789_v48, %v4952_v22  ;;  %v2900_v28 = vmul.f32 %v2878_v61, %v4954_v54 }
 0x4d0   : > { %2941 = vst [vmem:[%s4965_s24] sm:$0xff] %v2925_v45  ;;  %2943 = vst [vmem:[%s4965_s24 + $0x10] sm:$0xff] %v2927_v31  ;;  %v2913_v33 = vadd.f32 %v2897_v47, %v4880_v15  ;;  %v2915_v57 = vadd.f32 %v2899_v11, %v4900_v59 }
 0x4d1   : > { %2942 = vst [vmem:[%s4965_s24 + $0x8] sm:$0xff] %v2926_v55  ;;  %2944 = vst.msk [vmem:[%s4965_s24 + $0x18] sm:$0xff] %vm643_vm0, %v2928_v42  ;;  %v2914_v29 = vadd.f32 %v2898_v53, %v4882_v44  ;;  %v2916_v14 = vadd.f32 %v2900_v28, %v4902_v32  ;;  %v2793_v3 = vpop.f32.mrb[56].mxu0  ;;  %v2882_v13 = vpop.f32.mrb[56].mxu1 }
 0x4d2   : > { %v2929_v10 = vmul.f32 0.5, %v2913_v33  ;;  %v2931_v6 = vmul.f32 0.5, %v2915_v57  ;;  %v2901_v56 = vmul.f32 %v2793_v3, %v2679_v21  ;;  %v2903_v46 = vmul.f32 %v2882_v13, %v2693_v30  ;;  %v2795_v15 = vpop.f32.mrb[57].mxu0  ;;  %v2884_v24 = vpop.f32.mrb[57].mxu1 }
 0x4d3   : > { %v2930_v59 = vmul.f32 0.5, %v2914_v29  ;;  %v2932_v23 = vmul.f32 0.5, %v2916_v14  ;;  %v2902_v58 = vmul.f32 %v2795_v15, %v4952_v22  ;;  %v2904_v25 = vmul.f32 %v2884_v24, %v4954_v54 }
 0x4d4   : > { %2945 = vst [vmem:[%s4965_s24 + $0x20] sm:$0xff] %v2929_v10  ;;  %2947 = vst [vmem:[%s4965_s24 + $0x30] sm:$0xff] %v2931_v6  ;;  %v2917_v44 = vadd.f32 %v2901_v56, %v4885_v49  ;;  %v2919_v32 = vadd.f32 %v2903_v46, %v4906_v1 }
 0x4d5   : > { %2946 = vst [vmem:[%s4965_s24 + $0x28] sm:$0xff] %v2930_v59  ;;  %2948 = vst.msk [vmem:[%s4965_s24 + $0x38] sm:$0xff] %vm643_vm0, %v2932_v23  ;;  %v2918_v62 = vadd.f32 %v2902_v58, %v4888_v63  ;;  %v2920_v0 = vadd.f32 %v2904_v25, %v4910_v4  ;;  %v2799_v2 = vpop.f32.mrb[58].mxu0  ;;  %v2888_v38 = vpop.f32.mrb[58].mxu1 }
 0x4d6   : > { %v2933_v5 = vmul.f32 0.5, %v2917_v44  ;;  %v2935_v7 = vmul.f32 0.5, %v2919_v32  ;;  %v2905_v16 = vmul.f32 %v2799_v2, %v2679_v21  ;;  %v2907_v20 = vmul.f32 %v2888_v38, %v2693_v30  ;;  %v2801_v49 = vpop.f32.mrb[59].mxu0  ;;  %v2890_v18 = vpop.f32.mrb[59].mxu1 }
 0x4d7   : > { %v2934_v1 = vmul.f32 0.5, %v2918_v62  ;;  %v2936_v19 = vmul.f32 0.5, %v2920_v0  ;;  %v2906_v40 = vmul.f32 %v2801_v49, %v4952_v22  ;;  %v2908_v63 = vmul.f32 %v2890_v18, %v4954_v54 }
 0x4d8   : > { %2949 = vst [vmem:[%s4965_s24 + $0x40] sm:$0xff] %v2933_v5  ;;  %2951 = vst [vmem:[%s4965_s24 + $0x50] sm:$0xff] %v2935_v7  ;;  %v2921_v4 = vadd.f32 %v2905_v16, %v4891_v8  ;;  %v2923_v52 = vadd.f32 %v2907_v20, %v4914_v36 }
 0x4d9   : > { %2950 = vst [vmem:[%s4965_s24 + $0x48] sm:$0xff] %v2934_v1  ;;  %2952 = vst.msk [vmem:[%s4965_s24 + $0x58] sm:$0xff] %vm643_vm0, %v2936_v19  ;;  %v2922_v21 = vadd.f32 %v2906_v40, %v4894_v51  ;;  %v2924_v30 = vadd.f32 %v2908_v63, %v4918_v12 }
 0x4da   : > { %v2937_v17 = vmul.f32 0.5, %v2921_v4  ;;  %v2939_v37 = vmul.f32 0.5, %v2923_v52 }
 0x4db   : > { %v2938_v22 = vmul.f32 0.5, %v2922_v21  ;;  %v2940_v26 = vmul.f32 0.5, %v2924_v30 }
 0x4dc   : > { %2953 = vst [vmem:[%s4965_s24 + $0x60] sm:$0xff] %v2937_v17  ;;  %2955 = vst [vmem:[%s4965_s24 + $0x70] sm:$0xff] %v2939_v37 }
 0x4dd   : > { %2954 = vst [vmem:[%s4965_s24 + $0x68] sm:$0xff] %v2938_v22  ;;  %2956 = vst.msk [vmem:[%s4965_s24 + $0x78] sm:$0xff] %vm643_vm0, %v2940_v26 }
 0x4de PF: > { %s22_s21 = sadd.s32 1, %s3766_s21  }
 0x4df   : > { %p19_p4 = scmp.ge.s32.totalorder %s22_s21, 4  }
 0x4e1   :  { %21 = sbr.rel (!%p19_p4) target bundleno = 1 (0x1), region = 104 }

</bundles_post_ra>
